<compile_context>
chip_gen: v7x
topology: tpu7x:2x2x1
jax: 0.10.0
libtpu: 0.0.40
codegen_flags: <defaults>
</compile_context>

<pallas_src>
import functools

import jax
import jax.numpy as jnp
from jax.experimental import pallas as pl
from jax.experimental.pallas import tpu as pltpu


# ---------------------------------------------------------------------------
# Static network geometry (fixed by fc1 = Linear(16*7*7, num_classes))
# ---------------------------------------------------------------------------
H = W = 28          # conv input spatial
HP = WP = 30        # zero-padded spatial (padding=1)
C1 = 8              # conv1 output channels
C2 = 16             # conv2 output channels
PH = 14             # spatial after first 2x2 pool
PH2 = 7             # spatial after second 2x2 pool
NL = 128            # lane-padded logits width (>= num_classes, lane dense)


# ---------------------------------------------------------------------------
# The fused Pallas kernel (one grid step = B images, everything in VMEM)
# ---------------------------------------------------------------------------
def _fused_cnn_kernel(x_ref, m_ref, a1_ref, b1_ref, a2_ref, b2_ref,
                      wf_ref, bf_ref, out_ref, *, B):
    P = HP                      # per-image row period in the input slab
    R0 = B * P - 2              # conv1 output rows
    R1 = R0 - 1                 # pool1 output rows
    R2 = B * P - 3              # conv2 output rows (valid data at stride-2 rows)
    R3 = R2 - 2                 # pool2 output rows (valid data at stride-4 rows)
    R4 = R3 - 24                # fc partial rows (logits of image b at row b*P)

    # ---- conv1: 3 row-shifted banded matmuls + bias + ReLU ------------------
    o1 = jnp.dot(x_ref[pl.ds(0, R0), :], a1_ref[0],
                 preferred_element_type=jnp.float32)
    for dy in (1, 2):
        o1 = o1 + jnp.dot(x_ref[pl.ds(dy, R0), :], a1_ref[dy],
                          preferred_element_type=jnp.float32)
    o1 = jnp.maximum(o1 + b1_ref[...], 0.0)              # [R0, 28*8]

    # ---- maxpool 2x2/2: vertical = row r vs r+1, horizontal = lane shift C1 -
    v1 = jnp.maximum(o1[0:R1, :], o1[1:R1 + 1, :])
    h1 = jnp.maximum(v1[:, 0:(W - 1) * C1], v1[:, C1:W * C1])   # [R1, 216]
    # zero the per-image rows that must act as conv2's vertical zero padding
    h1 = h1 * m_ref[pl.ds(0, R1), :]
    h1p = jnp.concatenate(
        [jnp.zeros((2, (W - 1) * C1), jnp.float32), h1,
         jnp.zeros((4, (W - 1) * C1), jnp.float32)], axis=0)    # [B*P+3, 216]

    # ---- conv2 on the pooled grid (pooled rows live at stride 2) ------------
    o2 = jnp.dot(h1p[0:R2, :], a2_ref[0], preferred_element_type=jnp.float32)
    for dy in (1, 2):
        o2 = o2 + jnp.dot(h1p[2 * dy:2 * dy + R2, :], a2_ref[dy],
                          preferred_element_type=jnp.float32)
    o2 = jnp.maximum(o2 + b2_ref[...], 0.0)              # [R2, 14*16]

    # ---- maxpool 2x2/2: vertical pairs are rows r, r+2; horizontal shift C2 -
    v2 = jnp.maximum(o2[0:R3, :], o2[2:R3 + 2, :])
    h2 = jnp.maximum(v2[:, 0:(PH - 1) * C2], v2[:, C2:PH * C2])  # [R3, 208]

    # ---- fully connected: sum over the 7 pooled rows (taps at stride 4) -----
    logits = jnp.dot(h2[0:R4, :], wf_ref[0], preferred_element_type=jnp.float32)
    for j in range(1, PH2):
        logits = logits + jnp.dot(h2[4 * j:4 * j + R4, :], wf_ref[j],
                                  preferred_element_type=jnp.float32)
    logits = logits + bf_ref[...]                        # [R4, 128]

    # logits of image b live at row b*P; gather them into the [B, NL] block
    picked = [logits[b * P:b * P + 1, :] for b in range(B)]
    out_ref[...] = jnp.concatenate(picked, axis=0)


# ---------------------------------------------------------------------------
# One-time parameter preparation (banded conv matrices, permuted/padded FC)
# ---------------------------------------------------------------------------
def prepare_kernel_params(params, in_channels=1, num_classes=10):
    assert num_classes <= NL
    cin = in_channels
    w1, b1 = params["w1"], params["b1"]        # [8, cin, 3, 3], [8]
    w2, b2 = params["w2"], params["b2"]        # [16, 8, 3, 3], [16]
    wfc, bfc = params["wfc"], params["bfc"]    # [nc, 784], [nc]

    # conv1 banded matrices: rows = (w_in, cin), cols = (w, cout)
    a1 = []
    for dy in range(3):
        m = jnp.zeros((WP * cin, W * C1), jnp.float32)
        for dx in range(3):
            e = jnp.eye(WP, W, k=-dx, dtype=jnp.float32)          # w_in = w + dx
            blk = jnp.transpose(w1[:, :, dy, dx])                 # [cin, 8]
            m = m + jnp.kron(e, blk)
        a1.append(m)
    a1 = jnp.stack(a1, axis=0)                                     # [3, 30*cin, 224]

    # conv2 banded matrices: rows = pooled1 lanes (16*wo_in + cin), cols = (w2, cout)
    a2 = []
    for dy in range(3):
        m = jnp.zeros((PH * 2 * C1, PH * C2), jnp.float32)
        for dx in range(3):
            e = jnp.eye(PH, PH, k=1 - dx, dtype=jnp.float32)       # wo_in = w2 - 1 + dx
            blk = jnp.pad(jnp.transpose(w2[:, :, dy, dx]),         # [8,16] -> [16,16]
                          ((0, C1), (0, 0)))
            m = m + jnp.kron(e, blk)
        a2.append(m[:(W - 1) * C1, :])                             # [216, 224]
    a2 = jnp.stack(a2, axis=0)

    # FC tap matrices: rows = pooled2 lanes (32*wo2 + c2), cols = padded logits
    wfcr = wfc.reshape(num_classes, C2, PH2, PH2)                  # [n, c2, ho2, wo2]
    wfs = []
    for j in range(PH2):
        g = jnp.transpose(wfcr[:, :, j, :], (2, 1, 0))             # [wo2, c2, n]
        g = jnp.pad(g, ((0, 0), (0, C2), (0, NL - num_classes)))   # [7, 32, 128]
        g = g.reshape(PH2 * 2 * C2, NL)                            # [224, 128]
        wfs.append(g[:(PH - 1) * C2, :])                           # [208, 128]
    wf = jnp.stack(wfs, axis=0)

    b1v = jnp.tile(b1, W).reshape(1, W * C1)                       # [1, 224]
    b2v = jnp.tile(b2, PH).reshape(1, PH * C2)                     # [1, 224]
    bfv = jnp.pad(bfc, (0, NL - num_classes)).reshape(1, NL)       # [1, 128]

    return {"a1": a1, "b1": b1v, "a2": a2, "b2": b2v, "wf": wf, "bf": bfv}


# ---------------------------------------------------------------------------
# Forward pass
# ---------------------------------------------------------------------------
def cnn_forward(x_nchw, kp, num_classes=10):
    """x_nchw: [N, Cin, 28, 28] float32 -> logits [N, num_classes]."""
    N, cin = x_nchw.shape[0], x_nchw.shape[1]
    assert x_nchw.shape[2] == H and x_nchw.shape[3] == W

    # batch tile: 8 images per grid step when possible (keeps blocks 8-aligned)
    B = 8 if N >= 8 else N
    n_pad = ((N + B - 1) // B) * B
    x = x_nchw
    if n_pad != N:
        x = jnp.pad(x, ((0, n_pad - N), (0, 0), (0, 0), (0, 0)))

    # NCHW -> NHWC, zero-pad spatial to 30x30, flatten to the row-slab layout
    xs = jnp.transpose(x, (0, 2, 3, 1))
    xs = jnp.pad(xs, ((0, 0), (1, 1), (1, 1), (0, 0)))
    xs = xs.reshape(n_pad * HP, WP * cin)

    # per-image row mask realising conv2's vertical zero padding (row 28 of 30)
    mask = (jnp.arange(B * HP) % HP != H).astype(jnp.float32).reshape(B * HP, 1)

    kernel = functools.partial(_fused_cnn_kernel, B=B)
    out = pl.pallas_call(
        kernel,
        out_shape=jax.ShapeDtypeStruct((n_pad, NL), jnp.float32),
        grid_spec=pltpu.PrefetchScalarGridSpec(
            num_scalar_prefetch=0,
            grid=(n_pad // B,),
            in_specs=[
                pl.BlockSpec((B * HP, WP * cin), lambda i: (i, 0)),        # input slab
                pl.BlockSpec((B * HP, 1), lambda i: (0, 0)),               # row mask
                pl.BlockSpec((3, WP * cin, W * C1), lambda i: (0, 0, 0)),  # conv1 mats
                pl.BlockSpec((1, W * C1), lambda i: (0, 0)),               # bias1
                pl.BlockSpec((3, (W - 1) * C1, PH * C2), lambda i: (0, 0, 0)),  # conv2
                pl.BlockSpec((1, PH * C2), lambda i: (0, 0)),              # bias2
                pl.BlockSpec((PH2, (PH - 1) * C2, NL), lambda i: (0, 0, 0)),  # fc mats
                pl.BlockSpec((1, NL), lambda i: (0, 0)),                   # fc bias
            ],
            out_specs=pl.BlockSpec((B, NL), lambda i: (i, 0)),
        ),
        compiler_params=pltpu.CompilerParams(
            dimension_semantics=("parallel",)),
    )(xs, mask, kp["a1"], kp["b1"], kp["a2"], kp["b2"], kp["wf"], kp["bf"])

    return out[:N, :num_classes]


# ---------------------------------------------------------------------------
# Parameters (PyTorch-shaped) and pure-JAX reference
# ---------------------------------------------------------------------------
def init_params(key, in_channels=1, num_classes=10):
    ks = jax.random.split(key, 6)

    def u(k, shape, fan_in):
        bound = 1.0 / jnp.sqrt(float(fan_in))
        return jax.random.uniform(k, shape, jnp.float32, -bound, bound)

    return {
        "w1": u(ks[0], (C1, in_channels, 3, 3), in_channels * 9),
        "b1": u(ks[1], (C1,), in_channels * 9),
        "w2": u(ks[2], (C2, C1, 3, 3), C1 * 9),
        "b2": u(ks[3], (C2,), C1 * 9),
        "wfc": u(ks[4], (num_classes, C2 * PH2 * PH2), C2 * PH2 * PH2),
        "bfc": u(ks[5], (num_classes,), C2 * PH2 * PH2),
    }


def reference_forward(x_nchw, p):
    dn = ("NCHW", "OIHW", "NCHW")
    y = jax.lax.conv_general_dilated(x_nchw, p["w1"], (1, 1), "SAME",
                                     dimension_numbers=dn)
    y = jax.nn.relu(y + p["b1"][None, :, None, None])
    y = jax.lax.reduce_window(y, -jnp.inf, jax.lax.max,
                              (1, 1, 2, 2), (1, 1, 2, 2), "VALID")
    y = jax.lax.conv_general_dilated(y, p["w2"], (1, 1), "SAME",
                                     dimension_numbers=dn)
    y = jax.nn.relu(y + p["b2"][None, :, None, None])
    y = jax.lax.reduce_window(y, -jnp.inf, jax.lax.max,
                              (1, 1, 2, 2), (1, 1, 2, 2), "VALID")
    y = y.reshape(y.shape[0], -1)
    return y @ p["wfc"].T + p["bfc"]


if __name__ == "__main__":
    key = jax.random.PRNGKey(0)
    k_x, k_p = jax.random.split(key)

    # fc1 expects 16*7*7 features -> 28x28 input, in_channels=1 (module default)
    x = jax.random.normal(k_x, (2, 1, 28, 28), jnp.float32)
    params = init_params(k_p, in_channels=1, num_classes=10)
    kp = prepare_kernel_params(params, in_channels=1, num_classes=10)

    fwd = jax.jit(functools.partial(cnn_forward, num_classes=10))
    logits = jax.block_until_ready(fwd(x, kp))
    ref = jax.block_until_ready(reference_forward(x, params))

    assert logits.shape == (2, 10)
    assert jnp.allclose(logits, ref, rtol=2e-2, atol=2e-2), "mismatch vs reference"
    print("KERNEL_OK")
</pallas_src>

<mosaic_0001>
module attributes {stable_mosaic.version = 11 : i64} {
  func.func @_fused_cnn_kernel(%arg0: i32, %arg1: memref<60x30xf32, #tpu.memory_space<vmem>>, %arg2: memref<60x1xf32, #tpu.memory_space<vmem>>, %arg3: memref<3x30x224xf32, #tpu.memory_space<vmem>>, %arg4: memref<1x224xf32, #tpu.memory_space<vmem>>, %arg5: memref<3x216x224xf32, #tpu.memory_space<vmem>>, %arg6: memref<1x224xf32, #tpu.memory_space<vmem>>, %arg7: memref<7x208x128xf32, #tpu.memory_space<vmem>>, %arg8: memref<1x128xf32, #tpu.memory_space<vmem>>, %arg9: memref<2x128xf32, #tpu.memory_space<vmem>>) attributes {dimension_semantics = [#tpu.dimension_semantics<parallel>], iteration_bounds = array<i64: 1>, scalar_prefetch = 0 : i64, scratch_operands = 0 : i64, tpu.core_type = #tpu.core_type<tc>, window_params = [{transform_indices = @transform_0, window_bounds = array<i64: 60, 30>}, {pipeline_mode = #tpu.pipeline_mode<synchronous>, transform_indices = @transform_1, window_bounds = array<i64: 60, 1>}, {pipeline_mode = #tpu.pipeline_mode<synchronous>, transform_indices = @transform_2, window_bounds = array<i64: 3, 30, 224>}, {pipeline_mode = #tpu.pipeline_mode<synchronous>, transform_indices = @transform_3, window_bounds = array<i64: 1, 224>}, {pipeline_mode = #tpu.pipeline_mode<synchronous>, transform_indices = @transform_4, window_bounds = array<i64: 3, 216, 224>}, {pipeline_mode = #tpu.pipeline_mode<synchronous>, transform_indices = @transform_5, window_bounds = array<i64: 1, 224>}, {pipeline_mode = #tpu.pipeline_mode<synchronous>, transform_indices = @transform_6, window_bounds = array<i64: 7, 208, 128>}, {pipeline_mode = #tpu.pipeline_mode<synchronous>, transform_indices = @transform_7, window_bounds = array<i64: 1, 128>}, {transform_indices = @transform_8, window_bounds = array<i64: 2, 128>}]} {
    %c0 = arith.constant 0 : index
    %c0_0 = arith.constant 0 : index
    %0 = vector.load %arg1[%c0, %c0_0] : memref<60x30xf32, #tpu.memory_space<vmem>>, vector<58x30xf32>
    %c0_1 = arith.constant 0 : index
    %c0_2 = arith.constant 0 : index
    %c0_3 = arith.constant 0 : index
    %1 = vector.load %arg3[%c0_1, %c0_2, %c0_3] : memref<3x30x224xf32, #tpu.memory_space<vmem>>, vector<1x30x224xf32>
    %2 = vector.shape_cast %1 : vector<1x30x224xf32> to vector<30x224xf32>
    %cst = arith.constant dense<0.000000e+00> : vector<58x224xf32>
    %3 = tpu.matmul %0, %2, %cst {dimension_numbers = #tpu.dot_dimension_numbers<[1], [0], [0], [1], [0, 0, 1, 1], [], []>} : vector<58x30xf32>, vector<30x224xf32>, vector<58x224xf32> -> vector<58x224xf32>
    %c1 = arith.constant 1 : index
    %c0_4 = arith.constant 0 : index
    %4 = vector.load %arg1[%c1, %c0_4] : memref<60x30xf32, #tpu.memory_space<vmem>>, vector<58x30xf32>
    %c1_5 = arith.constant 1 : index
    %c0_6 = arith.constant 0 : index
    %c0_7 = arith.constant 0 : index
    %5 = vector.load %arg3[%c1_5, %c0_6, %c0_7] : memref<3x30x224xf32, #tpu.memory_space<vmem>>, vector<1x30x224xf32>
    %6 = vector.shape_cast %5 : vector<1x30x224xf32> to vector<30x224xf32>
    %cst_8 = arith.constant dense<0.000000e+00> : vector<58x224xf32>
    %7 = tpu.matmul %4, %6, %cst_8 {dimension_numbers = #tpu.dot_dimension_numbers<[1], [0], [0], [1], [0, 0, 1, 1], [], []>} : vector<58x30xf32>, vector<30x224xf32>, vector<58x224xf32> -> vector<58x224xf32>
    %8 = arith.addf %3, %7 : vector<58x224xf32>
    %c2 = arith.constant 2 : index
    %c0_9 = arith.constant 0 : index
    %9 = vector.load %arg1[%c2, %c0_9] : memref<60x30xf32, #tpu.memory_space<vmem>>, vector<58x30xf32>
    %c2_10 = arith.constant 2 : index
    %c0_11 = arith.constant 0 : index
    %c0_12 = arith.constant 0 : index
    %10 = vector.load %arg3[%c2_10, %c0_11, %c0_12] : memref<3x30x224xf32, #tpu.memory_space<vmem>>, vector<1x30x224xf32>
    %11 = vector.shape_cast %10 : vector<1x30x224xf32> to vector<30x224xf32>
    %cst_13 = arith.constant dense<0.000000e+00> : vector<58x224xf32>
    %12 = tpu.matmul %9, %11, %cst_13 {dimension_numbers = #tpu.dot_dimension_numbers<[1], [0], [0], [1], [0, 0, 1, 1], [], []>} : vector<58x30xf32>, vector<30x224xf32>, vector<58x224xf32> -> vector<58x224xf32>
    %13 = arith.addf %8, %12 : vector<58x224xf32>
    %c0_14 = arith.constant 0 : index
    %c0_15 = arith.constant 0 : index
    %14 = vector.load %arg4[%c0_14, %c0_15] : memref<1x224xf32, #tpu.memory_space<vmem>>, vector<1x224xf32>
    %15 = vector.broadcast %14 : vector<1x224xf32> to vector<58x224xf32>
    %16 = arith.addf %13, %15 : vector<58x224xf32>
    %cst_16 = arith.constant 0.000000e+00 : f32
    %17 = vector.broadcast %cst_16 : f32 to vector<58x224xf32>
    %18 = arith.maximumf %16, %17 : vector<58x224xf32>
    %19 = vector.extract_strided_slice %18 {offsets = [0, 0], sizes = [57, 224], strides = [1, 1]} : vector<58x224xf32> to vector<57x224xf32>
    %20 = vector.extract_strided_slice %18 {offsets = [1, 0], sizes = [57, 224], strides = [1, 1]} : vector<58x224xf32> to vector<57x224xf32>
    %21 = arith.maximumf %19, %20 : vector<57x224xf32>
    %22 = vector.extract_strided_slice %21 {offsets = [0, 0], sizes = [57, 216], strides = [1, 1]} : vector<57x224xf32> to vector<57x216xf32>
    %23 = vector.extract_strided_slice %21 {offsets = [0, 8], sizes = [57, 216], strides = [1, 1]} : vector<57x224xf32> to vector<57x216xf32>
    %24 = arith.maximumf %22, %23 : vector<57x216xf32>
    %c0_17 = arith.constant 0 : index
    %c0_18 = arith.constant 0 : index
    %25 = vector.load %arg2[%c0_17, %c0_18] : memref<60x1xf32, #tpu.memory_space<vmem>>, vector<57x1xf32>
    %26 = vector.broadcast %25 : vector<57x1xf32> to vector<57x216xf32>
    %27 = arith.mulf %24, %26 : vector<57x216xf32>
    %cst_19 = arith.constant 0.000000e+00 : f32
    %28 = vector.broadcast %cst_19 : f32 to vector<2x216xf32>
    %cst_20 = arith.constant 0.000000e+00 : f32
    %29 = vector.broadcast %cst_20 : f32 to vector<4x216xf32>
    %30 = tpu.concatenate %28, %27, %29 in 0 : vector<2x216xf32>, vector<57x216xf32>, vector<4x216xf32> -> vector<63x216xf32>
    %31 = vector.extract_strided_slice %30 {offsets = [0, 0], sizes = [57, 216], strides = [1, 1]} : vector<63x216xf32> to vector<57x216xf32>
    %c0_21 = arith.constant 0 : index
    %c0_22 = arith.constant 0 : index
    %c0_23 = arith.constant 0 : index
    %32 = vector.load %arg5[%c0_21, %c0_22, %c0_23] : memref<3x216x224xf32, #tpu.memory_space<vmem>>, vector<1x216x224xf32>
    %33 = vector.shape_cast %32 : vector<1x216x224xf32> to vector<216x224xf32>
    %cst_24 = arith.constant dense<0.000000e+00> : vector<57x224xf32>
    %34 = tpu.matmul %31, %33, %cst_24 {dimension_numbers = #tpu.dot_dimension_numbers<[1], [0], [0], [1], [0, 0, 1, 1], [], []>} : vector<57x216xf32>, vector<216x224xf32>, vector<57x224xf32> -> vector<57x224xf32>
    %35 = vector.extract_strided_slice %30 {offsets = [2, 0], sizes = [57, 216], strides = [1, 1]} : vector<63x216xf32> to vector<57x216xf32>
    %c1_25 = arith.constant 1 : index
    %c0_26 = arith.constant 0 : index
    %c0_27 = arith.constant 0 : index
    %36 = vector.load %arg5[%c1_25, %c0_26, %c0_27] : memref<3x216x224xf32, #tpu.memory_space<vmem>>, vector<1x216x224xf32>
    %37 = vector.shape_cast %36 : vector<1x216x224xf32> to vector<216x224xf32>
    %cst_28 = arith.constant dense<0.000000e+00> : vector<57x224xf32>
    %38 = tpu.matmul %35, %37, %cst_28 {dimension_numbers = #tpu.dot_dimension_numbers<[1], [0], [0], [1], [0, 0, 1, 1], [], []>} : vector<57x216xf32>, vector<216x224xf32>, vector<57x224xf32> -> vector<57x224xf32>
    %39 = arith.addf %34, %38 : vector<57x224xf32>
    %40 = vector.extract_strided_slice %30 {offsets = [4, 0], sizes = [57, 216], strides = [1, 1]} : vector<63x216xf32> to vector<57x216xf32>
    %c2_29 = arith.constant 2 : index
    %c0_30 = arith.constant 0 : index
    %c0_31 = arith.constant 0 : index
    %41 = vector.load %arg5[%c2_29, %c0_30, %c0_31] : memref<3x216x224xf32, #tpu.memory_space<vmem>>, vector<1x216x224xf32>
    %42 = vector.shape_cast %41 : vector<1x216x224xf32> to vector<216x224xf32>
    %cst_32 = arith.constant dense<0.000000e+00> : vector<57x224xf32>
    %43 = tpu.matmul %40, %42, %cst_32 {dimension_numbers = #tpu.dot_dimension_numbers<[1], [0], [0], [1], [0, 0, 1, 1], [], []>} : vector<57x216xf32>, vector<216x224xf32>, vector<57x224xf32> -> vector<57x224xf32>
    %44 = arith.addf %39, %43 : vector<57x224xf32>
    %c0_33 = arith.constant 0 : index
    %c0_34 = arith.constant 0 : index
    %45 = vector.load %arg6[%c0_33, %c0_34] : memref<1x224xf32, #tpu.memory_space<vmem>>, vector<1x224xf32>
    %46 = vector.broadcast %45 : vector<1x224xf32> to vector<57x224xf32>
    %47 = arith.addf %44, %46 : vector<57x224xf32>
    %cst_35 = arith.constant 0.000000e+00 : f32
    %48 = vector.broadcast %cst_35 : f32 to vector<57x224xf32>
    %49 = arith.maximumf %47, %48 : vector<57x224xf32>
    %50 = vector.extract_strided_slice %49 {offsets = [0, 0], sizes = [55, 224], strides = [1, 1]} : vector<57x224xf32> to vector<55x224xf32>
    %51 = vector.extract_strided_slice %49 {offsets = [2, 0], sizes = [55, 224], strides = [1, 1]} : vector<57x224xf32> to vector<55x224xf32>
    %52 = arith.maximumf %50, %51 : vector<55x224xf32>
    %53 = vector.extract_strided_slice %52 {offsets = [0, 0], sizes = [55, 208], strides = [1, 1]} : vector<55x224xf32> to vector<55x208xf32>
    %54 = vector.extract_strided_slice %52 {offsets = [0, 16], sizes = [55, 208], strides = [1, 1]} : vector<55x224xf32> to vector<55x208xf32>
    %55 = arith.maximumf %53, %54 : vector<55x208xf32>
    %56 = vector.extract_strided_slice %55 {offsets = [0, 0], sizes = [31, 208], strides = [1, 1]} : vector<55x208xf32> to vector<31x208xf32>
    %c0_36 = arith.constant 0 : index
    %c0_37 = arith.constant 0 : index
    %c0_38 = arith.constant 0 : index
    %57 = vector.load %arg7[%c0_36, %c0_37, %c0_38] : memref<7x208x128xf32, #tpu.memory_space<vmem>>, vector<1x208x128xf32>
    %58 = vector.shape_cast %57 : vector<1x208x128xf32> to vector<208x128xf32>
    %cst_39 = arith.constant dense<0.000000e+00> : vector<31x128xf32>
    %59 = tpu.matmul %56, %58, %cst_39 {dimension_numbers = #tpu.dot_dimension_numbers<[1], [0], [0], [1], [0, 0, 1, 1], [], []>} : vector<31x208xf32>, vector<208x128xf32>, vector<31x128xf32> -> vector<31x128xf32>
    %60 = vector.extract_strided_slice %55 {offsets = [4, 0], sizes = [31, 208], strides = [1, 1]} : vector<55x208xf32> to vector<31x208xf32>
    %c1_40 = arith.constant 1 : index
    %c0_41 = arith.constant 0 : index
    %c0_42 = arith.constant 0 : index
    %61 = vector.load %arg7[%c1_40, %c0_41, %c0_42] : memref<7x208x128xf32, #tpu.memory_space<vmem>>, vector<1x208x128xf32>
    %62 = vector.shape_cast %61 : vector<1x208x128xf32> to vector<208x128xf32>
    %cst_43 = arith.constant dense<0.000000e+00> : vector<31x128xf32>
    %63 = tpu.matmul %60, %62, %cst_43 {dimension_numbers = #tpu.dot_dimension_numbers<[1], [0], [0], [1], [0, 0, 1, 1], [], []>} : vector<31x208xf32>, vector<208x128xf32>, vector<31x128xf32> -> vector<31x128xf32>
    %64 = arith.addf %59, %63 : vector<31x128xf32>
    %65 = vector.extract_strided_slice %55 {offsets = [8, 0], sizes = [31, 208], strides = [1, 1]} : vector<55x208xf32> to vector<31x208xf32>
    %c2_44 = arith.constant 2 : index
    %c0_45 = arith.constant 0 : index
    %c0_46 = arith.constant 0 : index
    %66 = vector.load %arg7[%c2_44, %c0_45, %c0_46] : memref<7x208x128xf32, #tpu.memory_space<vmem>>, vector<1x208x128xf32>
    %67 = vector.shape_cast %66 : vector<1x208x128xf32> to vector<208x128xf32>
    %cst_47 = arith.constant dense<0.000000e+00> : vector<31x128xf32>
    %68 = tpu.matmul %65, %67, %cst_47 {dimension_numbers = #tpu.dot_dimension_numbers<[1], [0], [0], [1], [0, 0, 1, 1], [], []>} : vector<31x208xf32>, vector<208x128xf32>, vector<31x128xf32> -> vector<31x128xf32>
    %69 = arith.addf %64, %68 : vector<31x128xf32>
    %70 = vector.extract_strided_slice %55 {offsets = [12, 0], sizes = [31, 208], strides = [1, 1]} : vector<55x208xf32> to vector<31x208xf32>
    %c3 = arith.constant 3 : index
    %c0_48 = arith.constant 0 : index
    %c0_49 = arith.constant 0 : index
    %71 = vector.load %arg7[%c3, %c0_48, %c0_49] : memref<7x208x128xf32, #tpu.memory_space<vmem>>, vector<1x208x128xf32>
    %72 = vector.shape_cast %71 : vector<1x208x128xf32> to vector<208x128xf32>
    %cst_50 = arith.constant dense<0.000000e+00> : vector<31x128xf32>
    %73 = tpu.matmul %70, %72, %cst_50 {dimension_numbers = #tpu.dot_dimension_numbers<[1], [0], [0], [1], [0, 0, 1, 1], [], []>} : vector<31x208xf32>, vector<208x128xf32>, vector<31x128xf32> -> vector<31x128xf32>
    %74 = arith.addf %69, %73 : vector<31x128xf32>
    %75 = vector.extract_strided_slice %55 {offsets = [16, 0], sizes = [31, 208], strides = [1, 1]} : vector<55x208xf32> to vector<31x208xf32>
    %c4 = arith.constant 4 : index
    %c0_51 = arith.constant 0 : index
    %c0_52 = arith.constant 0 : index
    %76 = vector.load %arg7[%c4, %c0_51, %c0_52] : memref<7x208x128xf32, #tpu.memory_space<vmem>>, vector<1x208x128xf32>
    %77 = vector.shape_cast %76 : vector<1x208x128xf32> to vector<208x128xf32>
    %cst_53 = arith.constant dense<0.000000e+00> : vector<31x128xf32>
    %78 = tpu.matmul %75, %77, %cst_53 {dimension_numbers = #tpu.dot_dimension_numbers<[1], [0], [0], [1], [0, 0, 1, 1], [], []>} : vector<31x208xf32>, vector<208x128xf32>, vector<31x128xf32> -> vector<31x128xf32>
    %79 = arith.addf %74, %78 : vector<31x128xf32>
    %80 = vector.extract_strided_slice %55 {offsets = [20, 0], sizes = [31, 208], strides = [1, 1]} : vector<55x208xf32> to vector<31x208xf32>
    %c5 = arith.constant 5 : index
    %c0_54 = arith.constant 0 : index
    %c0_55 = arith.constant 0 : index
    %81 = vector.load %arg7[%c5, %c0_54, %c0_55] : memref<7x208x128xf32, #tpu.memory_space<vmem>>, vector<1x208x128xf32>
    %82 = vector.shape_cast %81 : vector<1x208x128xf32> to vector<208x128xf32>
    %cst_56 = arith.constant dense<0.000000e+00> : vector<31x128xf32>
    %83 = tpu.matmul %80, %82, %cst_56 {dimension_numbers = #tpu.dot_dimension_numbers<[1], [0], [0], [1], [0, 0, 1, 1], [], []>} : vector<31x208xf32>, vector<208x128xf32>, vector<31x128xf32> -> vector<31x128xf32>
    %84 = arith.addf %79, %83 : vector<31x128xf32>
    %85 = vector.extract_strided_slice %55 {offsets = [24, 0], sizes = [31, 208], strides = [1, 1]} : vector<55x208xf32> to vector<31x208xf32>
    %c6 = arith.constant 6 : index
    %c0_57 = arith.constant 0 : index
    %c0_58 = arith.constant 0 : index
    %86 = vector.load %arg7[%c6, %c0_57, %c0_58] : memref<7x208x128xf32, #tpu.memory_space<vmem>>, vector<1x208x128xf32>
    %87 = vector.shape_cast %86 : vector<1x208x128xf32> to vector<208x128xf32>
    %cst_59 = arith.constant dense<0.000000e+00> : vector<31x128xf32>
    %88 = tpu.matmul %85, %87, %cst_59 {dimension_numbers = #tpu.dot_dimension_numbers<[1], [0], [0], [1], [0, 0, 1, 1], [], []>} : vector<31x208xf32>, vector<208x128xf32>, vector<31x128xf32> -> vector<31x128xf32>
    %89 = arith.addf %84, %88 : vector<31x128xf32>
    %c0_60 = arith.constant 0 : index
    %c0_61 = arith.constant 0 : index
    %90 = vector.load %arg8[%c0_60, %c0_61] : memref<1x128xf32, #tpu.memory_space<vmem>>, vector<1x128xf32>
    %91 = vector.broadcast %90 : vector<1x128xf32> to vector<31x128xf32>
    %92 = arith.addf %89, %91 : vector<31x128xf32>
    %93 = vector.extract_strided_slice %92 {offsets = [0, 0], sizes = [1, 128], strides = [1, 1]} : vector<31x128xf32> to vector<1x128xf32>
    %94 = vector.extract_strided_slice %92 {offsets = [30, 0], sizes = [1, 128], strides = [1, 1]} : vector<31x128xf32> to vector<1x128xf32>
    %95 = tpu.concatenate %93, %94 in 0 : vector<1x128xf32>, vector<1x128xf32> -> vector<2x128xf32>
    %c0_62 = arith.constant 0 : index
    %c0_63 = arith.constant 0 : index
    %96 = vector.load %arg9[%c0_62, %c0_63] : memref<2x128xf32, #tpu.memory_space<vmem>>, vector<2x128xf32>
    tpu.vector_store %arg9[%c0_62, %c0_63], %95 {strides = array<i32>} : memref<2x128xf32, #tpu.memory_space<vmem>>, vector<2x128xf32>,
    return
  }
  func.func @transform_0(%arg0: i32) -> (i32, i32) {
    %c0_i32 = arith.constant 0 : i32
    %c0_i32_0 = arith.constant 0 : i32
    return %arg0, %c0_i32 : i32, i32
  }
  func.func @transform_1(%arg0: i32) -> (i32, i32) {
    %c0_i32 = arith.constant 0 : i32
    %c0_i32_0 = arith.constant 0 : i32
    %c0_i32_1 = arith.constant 0 : i32
    return %c0_i32, %c0_i32_0 : i32, i32
  }
  func.func @transform_2(%arg0: i32) -> (i32, i32, i32) {
    %c0_i32 = arith.constant 0 : i32
    %c0_i32_0 = arith.constant 0 : i32
    %c0_i32_1 = arith.constant 0 : i32
    %c0_i32_2 = arith.constant 0 : i32
    return %c0_i32, %c0_i32_0, %c0_i32_1 : i32, i32, i32
  }
  func.func @transform_3(%arg0: i32) -> (i32, i32) {
    %c0_i32 = arith.constant 0 : i32
    %c0_i32_0 = arith.constant 0 : i32
    %c0_i32_1 = arith.constant 0 : i32
    return %c0_i32, %c0_i32_0 : i32, i32
  }
  func.func @transform_4(%arg0: i32) -> (i32, i32, i32) {
    %c0_i32 = arith.constant 0 : i32
    %c0_i32_0 = arith.constant 0 : i32
    %c0_i32_1 = arith.constant 0 : i32
    %c0_i32_2 = arith.constant 0 : i32
    return %c0_i32, %c0_i32_0, %c0_i32_1 : i32, i32, i32
  }
  func.func @transform_5(%arg0: i32) -> (i32, i32) {
    %c0_i32 = arith.constant 0 : i32
    %c0_i32_0 = arith.constant 0 : i32
    %c0_i32_1 = arith.constant 0 : i32
    return %c0_i32, %c0_i32_0 : i32, i32
  }
  func.func @transform_6(%arg0: i32) -> (i32, i32, i32) {
    %c0_i32 = arith.constant 0 : i32
    %c0_i32_0 = arith.constant 0 : i32
    %c0_i32_1 = arith.constant 0 : i32
    %c0_i32_2 = arith.constant 0 : i32
    return %c0_i32, %c0_i32_0, %c0_i32_1 : i32, i32, i32
  }
  func.func @transform_7(%arg0: i32) -> (i32, i32) {
    %c0_i32 = arith.constant 0 : i32
    %c0_i32_0 = arith.constant 0 : i32
    %c0_i32_1 = arith.constant 0 : i32
    return %c0_i32, %c0_i32_0 : i32, i32
  }
  func.func @transform_8(%arg0: i32) -> (i32, i32) {
    %c0_i32 = arith.constant 0 : i32
    %c0_i32_0 = arith.constant 0 : i32
    return %arg0, %c0_i32 : i32, i32
  }
}

</mosaic_0001>

<bundles_post_ra>
// kernel: cnn_forward.1
= control target key start
LH: loop header
LB: loop body
LE: loop exit
PB: predicated region body
PF: predicated region fallthrough
CT: control target
= control target key end

     0   :  { %13 = vsyncpa [#allocation3], 0  ;;  %s4515_s0 = inlined_call_operand.vmem [shape: f32[60,30], index: 0, kind: input, shape index: {}]   ;;  %s4516_s1 = inlined_call_operand.vmem [shape: f32[60,1], index: 1, kind: input, shape index: {}]   ;;  %s4517_s2 = inlined_call_operand.vmem [shape: f32[3,30,224], index: 2, kind: input, shape index: {}]   ;;  %s4518_s3 = inlined_call_operand.vmem [shape: f32[1,224], index: 3, kind: input, shape index: {}]   ;;  %s4519_s4 = inlined_call_operand.hbm [shape: f32[3,216,224], index: 4, kind: input, shape index: {}]   ;;  %s4520_s5 = inlined_call_operand.vmem [shape: f32[1,224], index: 5, kind: input, shape index: {}]   ;;  %s4521_s6 = inlined_call_operand.hbm [shape: f32[7,208,128], index: 6, kind: input, shape index: {}]   ;;  %s4522_s7 = inlined_call_operand.vmem [shape: f32[1,128], index: 7, kind: input, shape index: {}]   ;;  %s4523_s8 = inlined_call_operand.hbm [shape: f32[2,128], index: 8, kind: output, shape index: {}]  }
   0x1   :  { %14 = vsyncpa [#allocation6], 0 }
   0x2   :  { %15 = vsyncpa [#allocation4], 0  ;;  %s3338_s27 = smov [#allocation2]   ;;  %s3266_s9 = scalar_lea.hbm %s4519_s4, 20736 }
   0x3   :  { %s29_s28 = sshll.u32 %s3338_s27, 4  ;;  %p3267_p0 = scmp.ne.s32.totalorder %s4519_s4, %s3266_s9  ;;  %s30_s28 = int_to_ptr.vmem [resolvable:$true] %s29_s28 }
   0x4   :  { %p3270_p1 = scmp.lt.u32.totalorder %s3266_s9, %s4519_s4 }
   0x6   :  { %p3272_p2 = pnand %p3270_p1, %p3267_p0 }
   0x8   :  { %3275 = shalt.err (!%p3272_p2)
}
   0x9   :  { %s3276_s14 = scalar_lea.vmem %s30_s28, 20736  ;;  %p3281_p4 = scmp.lt.s32.totalorder %s30_s28, %s30_s28 }
   0xa   :  { %p3277_p3 = scmp.ne.s32.totalorder %s30_s28, %s3276_s14  ;;  %p3282_p5 = scmp.lt.s32.totalorder %s3276_s14, %s3276_s14 }
   0xc   :  { %p3283_p6 = por %p3282_p5, %p3281_p4 }
   0xe   :  { %p3284_p7 = pnand %p3283_p6, %p3277_p3 }
  0x10   :  { %3287 = shalt.err (!%p3284_p7)
}
  0x11   :  { %s3339_s15 = smov 256   ;;  %s3340_s16 = smov 16  }
  0x12   :  { %35 = dma.hbm_to_vmem [thread:$0]  %s4519_s4, 20736, %s30_s28, [#allocation3], %s3339_s15, %s3339_s15, %s3340_s16  }
  0x13   :  { %s3341_s19 = smov [#allocation5]   ;;  %s3288_s23 = scalar_lea.hbm %s4521_s6, 23296 }
  0x14   :  { %s43_s20 = sshll.u32 %s3341_s19, 4  ;;  %p3289_p8 = scmp.ne.s32.totalorder %s4521_s6, %s3288_s23  ;;  %s44_s20 = int_to_ptr.vmem [resolvable:$true] %s43_s20 }
  0x15   :  { %p3292_p9 = scmp.lt.u32.totalorder %s3288_s23, %s4521_s6 }
  0x17   :  { %p3294_p10 = pnand %p3292_p9, %p3289_p8 }
  0x19   :  { %3297 = shalt.err (!%p3294_p10)
}
  0x1a   :  { %s3298_s29 = scalar_lea.vmem %s44_s20, 23296  ;;  %p3303_p12 = scmp.lt.s32.totalorder %s44_s20, %s44_s20 }
  0x1b   :  { %p3299_p11 = scmp.ne.s32.totalorder %s44_s20, %s3298_s29  ;;  %p3304_p13 = scmp.lt.s32.totalorder %s3298_s29, %s3298_s29 }
  0x1d   :  { %p3305_p0 = por %p3304_p13, %p3303_p12 }
  0x1f   :  { %p3306_p1 = pnand %p3305_p0, %p3299_p11 }
  0x21   :  { %3309 = shalt.err (!%p3306_p1)
}
  0x22   :  { %s3342_s4 = smov 128   ;;  %s3343_s28 = smov 8  }
  0x23   :  { %49 = dma.hbm_to_vmem [thread:$0]  %s4521_s6, 23296, %s44_s20, [#allocation6], %s3342_s4, %s3342_s4, %s3343_s28  }
  0x24   :  { %3332 = dma.done.wait [#allocation3], 20736  }
  0x25   :  { %3333 = vsyncadd [#allocation3], 4294946560 }
  0x26   :  { %3334 = dma.done.wait [#allocation6], 23296  }
  0x27   :  { %3335 = vsyncadd [#allocation6], 4294944000  ;;  %v3344_v0 = vmov 0.0   ;;  %v3345_v1 = vmov 0   ;;  %vm116_vm0 = vcmask 1045504   ;;  %v2622_v2 = vld [vmem:[%s4517_s2 + $0x48] sm:$0xff] }
  0x28   :  { %187 = vmatprep.mubr.f32.mxu0 %v3344_v0  ;;  %3259 = vset.pattern.permute.xlu0 %v3345_v1  ;;  %v2624_v3 = vld [vmem:[%s4517_s2 + $0x58] sm:$0xff]  ;;  %v2621_v4 = vld [vmem:[%s4517_s2 + $0x40] sm:$0xff]  ;;  %v2623_v6 = vld [vmem:[%s4517_s2 + $0x50] sm:$0xff]  ;;  %vm3346_vm1 = vmmov 1   ;;  %vm91_vm3 = vcmask 244736   ;;  %vm615_vm4 = vcmask 1046528  }
  0x29   :  { %3260 = vset.pattern.permute.xlu1 %v3345_v1  ;;  %v2723_v5 = vpack.c.bf16 %v2624_v3, %v2622_v2  ;;  %v2626_v7 = vld [vmem:[%s4517_s2 + $0x68] sm:$0xff]  ;;  %v2628_v8 = vld [vmem:[%s4517_s2 + $0x78] sm:$0x3f]  ;;  %v2725_v9 = vpack.c.bf16 %v2623_v6, %v2621_v4  ;;  %vm3440_vm2 = vmpackc.low %vm116_vm0, %vm3346_vm1  ;;  %vm726_vm5 = vcmask 982016   ;;  %vm847_vm6 = vcmask 1041408   ;;  %s3350_s27 = smov [#allocation7]  }
  0x2a   :  { %v2727_v10 = vpack.c.bf16 %v2628_v8, %v2626_v7  ;;  %v2625_v12 = vld [vmem:[%s4517_s2 + $0x60] sm:$0xff]  ;;  %v2627_v13 = vld [vmem:[%s4517_s2 + $0x70] sm:$0x3f]  ;;  %v67_v14 = vld [vmem:[%s4517_s2 + $0x8] sm:$0xff]  ;;  %vm1044_vm7 = vcmask 719872   ;;  %vm1358_vm8 = vcmask 1043456  }
  0x2b   :  { %2724 = vmatprep.subr.bf16.mxu0 %v2723_v5  ;;  %v69_v15 = vld [vmem:[%s4517_s2 + $0x18] sm:$0xff]  ;;  %v2730_v16 = vpack.c.bf16 %v2627_v13, %v2625_v12  ;;  %v66_v18 = vld [vmem:[%s4517_s2] sm:$0xff]  ;;  %v68_v19 = vld [vmem:[%s4517_s2 + $0x10] sm:$0xff]  ;;  %vm890_vm9 = vcmask 1042432   ;;  %vm1702_vm11 = vcmask 916480   ;;  %vm1823_vm12 = vcmask 654336  }
  0x2c   :  { %2726 = vmatpush1.bf16.msra.mxu0 %v2725_v9  ;;  %v2733_v17 = vpack.c.bf16 %v69_v15, %v67_v14  ;;  %v71_v20 = vld [vmem:[%s4517_s2 + $0x28] sm:$0xff]  ;;  %v73_v21 = vld [vmem:[%s4517_s2 + $0x38] sm:$0x3f]  ;;  %v2735_v23 = vpack.c.bf16 %v68_v19, %v66_v18  ;;  %v70_v25 = vld [vmem:[%s4517_s2 + $0x20] sm:$0xff]  ;;  %s2611_s29 = sshll.u32 %s3350_s27, 4  ;;  %vm2602_vm13 = vcmask 1040384   ;;  %s2612_s29 = int_to_ptr.vmem [resolvable:$true] %s2611_s29 }
  0x2d   :  { %2729 = vmatprep.subr.msk.bf16.mxu0 %vm3440_vm2, %v2727_v10  ;;  %v74_v22 = vld [vmem:[%s4515_s0 + $0x1] sm:$0xff]  ;;  %v2737_v24 = vpack.c.bf16 %v73_v21, %v71_v20  ;;  %v72_v26 = vld [vmem:[%s4517_s2 + $0x30] sm:$0x3f]  ;;  %v2652_v28 = vld [vmem:[%s4517_s2 + $0x98] sm:$0xff]  ;;  %s3310_s4 = scalar_lea.vmem %s2612_s29, 32  ;;  %p3315_p3 = scmp.lt.s32.totalorder %s2612_s29, %s2612_s29 }
  0x2e   :  { %v2650_v27 = vld [vmem:[%s4517_s2 + $0x88] sm:$0xff]  ;;  %v2740_v30 = vpack.c.bf16 %v72_v26, %v70_v25  ;;  %v76_v32 = vld [vmem:[%s4515_s0 + $0x11] sm:$0xff]  ;;  %v767_v33 = vld [vmem:[%s4516_s1] sm:$0xff]  ;;  %p3311_p2 = scmp.ne.s32.totalorder %s2612_s29, %s3310_s4  ;;  %p3316_p4 = scmp.lt.s32.totalorder %s3310_s4, %s3310_s4 }
  0x2f   :  { %v75_v29 = vld [vmem:[%s4515_s0 + $0x9] sm:$0xff]  ;;  %v2743_v31 = vpack.c.bf16 %v2652_v28, %v2650_v27  ;;  %777 = vperm.xlu0 %3259, %v767_v33   ;;  %v77_v34 = vld [vmem:[%s4515_s0 + $0x19] sm:$0xff]  ;;  %v78_v35 = vld [vmem:[%s4515_s0 + $0x21] sm:$0xff] }
  0x30   :  { %2732 = vmatpush1.bf16.msk.msra.mxu0 %vm3440_vm2, %v2730_v16  ;;  %v79_v36 = vld [vmem:[%s4515_s0 + $0x29] sm:$0xff]  ;;  %v80_v37 = vld [vmem:[%s4515_s0 + $0x31] sm:$0xff]  ;;  %v81_v38 = vld [vmem:[%s4515_s0 + $0x39] sm:$0x3]  ;;  %p3317_p5 = por %p3316_p4, %p3315_p3 }
  0x31   :  { %2734 = vmatprep.subr.bf16.mxu0 %v2733_v17  ;;  %v2649_v39 = vld [vmem:[%s4517_s2 + $0x80] sm:$0xff]  ;;  %v2651_v40 = vld [vmem:[%s4517_s2 + $0x90] sm:$0xff]  ;;  %v2654_v41 = vld [vmem:[%s4517_s2 + $0xa8] sm:$0xff] }
  0x32   :  { %v2656_v42 = vld [vmem:[%s4517_s2 + $0xb8] sm:$0x3f]  ;;  %v58_v43 = vld [vmem:[%s4515_s0] sm:$0xff]  ;;  %v2745_v44 = vpack.c.bf16 %v2651_v40, %v2649_v39  ;;  %v2655_v47 = vld [vmem:[%s4517_s2 + $0xb0] sm:$0x3f]  ;;  %p3318_p6 = pnand %p3317_p5, %p3311_p2 }
  0x33   :  { %2631 = vmatmul.mubr.msk.f32.vlgmr.msra.gmra.mrb[0].mxu0 %vm91_vm3, %v74_v22  ;;  %v2747_v45 = vpack.c.bf16 %v2656_v42, %v2654_v41  ;;  %v2653_v46 = vld [vmem:[%s4517_s2 + $0xa0] sm:$0xff]  ;;  %v59_v48 = vld [vmem:[%s4515_s0 + $0x8] sm:$0xff]  ;;  %v60_v50 = vld [vmem:[%s4515_s0 + $0x10] sm:$0xff] }
  0x34   :  { %2736 = vmatpush1.bf16.msra.mxu0 %v2735_v23  ;;  %193 = vmatprep.mubr.f32.mxu0 %v3344_v0  ;;  %v2750_v49 = vpack.c.bf16 %v2655_v47, %v2653_v46  ;;  %v61_v51 = vld [vmem:[%s4515_s0 + $0x18] sm:$0xff]  ;;  %v62_v52 = vld [vmem:[%s4515_s0 + $0x20] sm:$0xff]  ;;  %v63_v53 = vld [vmem:[%s4515_s0 + $0x28] sm:$0xff] }
  0x35   :  { %2739 = vmatprep.subr.msk.bf16.mxu0 %vm3440_vm2, %v2737_v24  ;;  %v64_v54 = vld [vmem:[%s4515_s0 + $0x30] sm:$0xff]  ;;  %v65_v55 = vld [vmem:[%s4515_s0 + $0x38] sm:$0x3]  ;;  %v379_v56 = vld [vmem:[%s4515_s0 + $0x2] sm:$0xff] }
  0x36   :  { %v380_v57 = vld [vmem:[%s4515_s0 + $0xa] sm:$0xff]  ;;  %v381_v58 = vld [vmem:[%s4515_s0 + $0x12] sm:$0xff]  ;;  %v382_v59 = vld [vmem:[%s4515_s0 + $0x1a] sm:$0xff] }
  0x37   :  { %2632 = vmatmul.mubr.msk.f32.gmra.mrb[2].mxu0 %vm91_vm3, %v75_v29  ;;  %v383_v60 = vld [vmem:[%s4515_s0 + $0x22] sm:$0xff]  ;;  %v384_v61 = vld [vmem:[%s4515_s0 + $0x2a] sm:$0xff]  ;;  %v385_v62 = vld [vmem:[%s4515_s0 + $0x32] sm:$0xff] }
  0x38   :  { %199 = vmatprep.mubr.f32.mxu0 %v3344_v0  ;;  %2742 = vmatpush1.bf16.msk.msra.mxu0 %vm3440_vm2, %v2740_v30  ;;  %v386_v63 = vld [vmem:[%s4515_s0 + $0x3a] sm:$0x3]  ;;  %v768_v1 = vld [vmem:[%s4516_s1 + $0x8] sm:$0xff]  ;;  %v948_v4 = vld [vmem:[#allocation2 + $0x1b0] sm:$0xff] }
  0x39   :  { %2744 = vmatprep.subr.bf16.mxu0 %v2743_v31  ;;  %782 = vperm.xlu0 %3259, %v768_v1   ;;  %v949_v2 = vld [vmem:[#allocation2 + $0x1b8] sm:$0xff]  ;;  %v951_v3 = vld [vmem:[#allocation2 + $0x1c8] sm:$0xff]  ;;  %v950_v6 = vld [vmem:[#allocation2 + $0x1c0] sm:$0xff] }
  0x3a   :  { %v2753_v5 = vpack.c.bf16 %v951_v3, %v949_v2  ;;  %v953_v7 = vld [vmem:[#allocation2 + $0x1d8] sm:$0xff]  ;;  %v955_v8 = vld [vmem:[#allocation2 + $0x1e8] sm:$0xff]  ;;  %v2755_v9 = vpack.c.bf16 %v950_v6, %v948_v4  ;;  %v952_v10 = vld [vmem:[#allocation2 + $0x1d0] sm:$0xff] }
  0x3b   :  { %2633 = vmatmul.mubr.msk.f32.gmra.mrb[4].mxu0 %vm91_vm3, %v76_v32  ;;  %v954_v11 = vld [vmem:[#allocation2 + $0x1e0] sm:$0xff]  ;;  %v957_v12 = vld [vmem:[#allocation2 + $0x1f8] sm:$0xff]  ;;  %v959_v13 = vld [vmem:[#allocation2 + $0x208] sm:$0xff] }
  0x3c   :  { %205 = vmatprep.mubr.f32.mxu0 %v3344_v0  ;;  %2754 = vmatprep.subr.bf16.mxu1 %v2753_v5  ;;  %v2759_v14 = vpack.c.bf16 %v954_v11, %v952_v10  ;;  %v2761_v15 = vpack.c.bf16 %v959_v13, %v957_v12  ;;  %v956_v16 = vld [vmem:[#allocation2 + $0x1f0] sm:$0xff]  ;;  %v958_v17 = vld [vmem:[#allocation2 + $0x200] sm:$0xff]  ;;  %v961_v18 = vld [vmem:[#allocation2 + $0x218] sm:$0xff] }
  0x3d   :  { %2756 = vmatpush1.bf16.msra.mxu1 %v2755_v9  ;;  %v963_v19 = vld [vmem:[#allocation2 + $0x228] sm:$0xff]  ;;  %v2763_v20 = vpack.c.bf16 %v958_v17, %v956_v16  ;;  %v960_v22 = vld [vmem:[#allocation2 + $0x210] sm:$0xff]  ;;  %v962_v23 = vld [vmem:[#allocation2 + $0x220] sm:$0xff] }
  0x3e   :  { %v2765_v21 = vpack.c.bf16 %v963_v19, %v961_v18  ;;  %v965_v24 = vld [vmem:[#allocation2 + $0x238] sm:$0xff]  ;;  %v967_v25 = vld [vmem:[#allocation2 + $0x248] sm:$0xff]  ;;  %v2767_v26 = vpack.c.bf16 %v962_v23, %v960_v22  ;;  %v964_v28 = vld [vmem:[#allocation2 + $0x230] sm:$0xff] }
  0x3f   :  { %2634 = vmatmul.mubr.msk.f32.gmra.mrb[6].mxu0 %vm91_vm3, %v77_v34  ;;  %v2769_v27 = vpack.c.bf16 %v967_v25, %v965_v24  ;;  %v966_v29 = vld [vmem:[#allocation2 + $0x240] sm:$0xff]  ;;  %v969_v30 = vld [vmem:[#allocation2 + $0x258] sm:$0xff]  ;;  %v971_v31 = vld [vmem:[#allocation2 + $0x268] sm:$0xff] }
  0x40   :  { %211 = vmatprep.mubr.f32.mxu0 %v3344_v0  ;;  %v2771_v32 = vpack.c.bf16 %v966_v29, %v964_v28  ;;  %v2773_v33 = vpack.c.bf16 %v971_v31, %v969_v30  ;;  %v968_v34 = vld [vmem:[#allocation2 + $0x250] sm:$0xff]  ;;  %v974_v41 = vld [vmem:[#allocation2 + $0x280] sm:$0xff]  ;;  %v977_v42 = vld [vmem:[#allocation2 + $0x298] sm:$0xff] }
  0x41   :  { %v972_v40 = vld [vmem:[#allocation2 + $0x270] sm:$0xff]  ;;  %v978_v47 = vld [vmem:[#allocation2 + $0x2a0] sm:$0xff]  ;;  %v989_v9 = vld [vmem:[#allocation2 + $0x2f8] sm:$0xff] }
  0x42   :  { %v976_v46 = vld [vmem:[#allocation2 + $0x290] sm:$0xff]  ;;  %v986_v4 = vld [vmem:[#allocation2 + $0x2e0] sm:$0xff]  ;;  %v995_v22 = vld [vmem:[#allocation2 + $0x328] sm:$0xff] }
  0x43   :  { %2635 = vmatmul.mubr.msk.f32.gmra.mrb[8].mxu0 %vm91_vm3, %v78_v35  ;;  %v970_v35 = vld [vmem:[#allocation2 + $0x260] sm:$0xff]  ;;  %v984_v3 = vld [vmem:[#allocation2 + $0x2d0] sm:$0xff]  ;;  %vm2676_vm10 = vmneg %vm847_vm6 }
  0x44   :  { %217 = vmatprep.mubr.f32.mxu0 %v3344_v0  ;;  %v988_v12 = vld [vmem:[#allocation2 + $0x2f0] sm:$0xff]  ;;  %v990_v13 = vld [vmem:[#allocation2 + $0x300] sm:$0xff] }
  0x45   :  { %v2795_v17 = vpack.c.bf16 %v990_v13, %v988_v12 }
  0x47   :  { %2636 = vmatmul.mubr.msk.f32.gmra.mrb[10].mxu0 %vm91_vm3, %v79_v36  ;;  %v973_v36 = vld [vmem:[#allocation2 + $0x278] sm:$0xff] }
  0x48   :  { %223 = vmatprep.mubr.f32.mxu0 %v3344_v0 }
  0x4b   :  { %2637 = vmatmul.mubr.msk.f32.gmra.mrb[12].mxu0 %vm91_vm3, %v80_v37  ;;  %v975_v37 = vld [vmem:[#allocation2 + $0x288] sm:$0xff] }
  0x4c   :  { %229 = vmatprep.mubr.f32.mxu0 %v3344_v0  ;;  %v2777_v39 = vpack.c.bf16 %v975_v37, %v973_v36 }
  0x4f   :  { %2638 = vmatmul.mubr.msk.f32.gmra.mrb[14].mxu0 %vm91_vm3, %v81_v38  ;;  %v2775_v38 = vpack.c.bf16 %v970_v35, %v968_v34 }
  0x50   :  { %330 = vmatprep.mubr.f32.mxu0 %v3344_v0 }
  0x53   :  { %2641 = vmatmul.mubr.msk.f32.vlgmr.msra.gmra.mrb[0].mxu0 %vm91_vm3, %v58_v43  ;;  %v979_v43 = vld [vmem:[#allocation2 + $0x2a8] sm:$0xff] }
  0x54   :  { %2746 = vmatpush1.bf16.msra.mxu0 %v2745_v44  ;;  %336 = vmatprep.mubr.f32.mxu0 %v3344_v0  ;;  %v2779_v44 = vpack.c.bf16 %v974_v41, %v972_v40 }
  0x55   :  { %2749 = vmatprep.subr.msk.bf16.mxu0 %vm3440_vm2, %v2747_v45  ;;  %v2781_v45 = vpack.c.bf16 %v979_v43, %v977_v42 }
  0x57   :  { %2642 = vmatmul.mubr.msk.f32.gmra.mrb[2].mxu0 %vm91_vm3, %v59_v48  ;;  %v981_v48 = vld [vmem:[#allocation2 + $0x2b8] sm:$0xff] }
  0x58   :  { %342 = vmatprep.mubr.f32.mxu0 %v3344_v0  ;;  %2752 = vmatpush1.bf16.msk.msra.mxu0 %vm3440_vm2, %v2750_v49  ;;  %v983_v49 = vld [vmem:[#allocation2 + $0x2c8] sm:$0xff] }
  0x5b   :  { %2643 = vmatmul.mubr.msk.f32.gmra.mrb[4].mxu0 %vm91_vm3, %v60_v50  ;;  %v2783_v50 = vpack.c.bf16 %v978_v47, %v976_v46  ;;  %v998_v46 = vld [vmem:[#allocation2 + $0x340] sm:$0xff] }
  0x5c   :  { %348 = vmatprep.mubr.f32.mxu0 %v3344_v0 }
  0x5f   :  { %2644 = vmatmul.mubr.msk.f32.gmra.mrb[6].mxu0 %vm91_vm3, %v61_v51  ;;  %v2785_v51 = vpack.c.bf16 %v983_v49, %v981_v48 }
  0x60   :  { %354 = vmatprep.mubr.f32.mxu0 %v3344_v0 }
  0x63   :  { %2645 = vmatmul.mubr.msk.f32.gmra.mrb[8].mxu0 %vm91_vm3, %v62_v52  ;;  %v980_v52 = vld [vmem:[#allocation2 + $0x2b0] sm:$0xff] }
  0x64   :  { %360 = vmatprep.mubr.f32.mxu0 %v3344_v0 }
  0x67   :  { %2646 = vmatmul.mubr.msk.f32.gmra.mrb[10].mxu0 %vm91_vm3, %v63_v53  ;;  %v982_v53 = vld [vmem:[#allocation2 + $0x2c0] sm:$0xff] }
  0x68   :  { %366 = vmatprep.mubr.f32.mxu0 %v3344_v0 }
  0x6b   :  { %2647 = vmatmul.mubr.msk.f32.gmra.mrb[12].mxu0 %vm91_vm3, %v64_v54  ;;  %v2787_v54 = vpack.c.bf16 %v982_v53, %v980_v52 }
  0x6c   :  { %372 = vmatprep.mubr.f32.mxu0 %v3344_v0 }
  0x6f   :  { %2648 = vmatmul.mubr.msk.f32.gmra.mrb[14].mxu0 %vm91_vm3, %v65_v55  ;;  %v557_v55 = vlaneseq }
  0x70   :  { %490 = vmatprep.mubr.f32.mxu0 %v3344_v0 }
  0x73   :  { %2659 = vmatmul.mubr.msk.f32.vlgmr.msra.gmra.mrb[0].mxu0 %vm91_vm3, %v379_v56  ;;  %v3635_v56 = vshrl.u32 %v557_v55, 7 }
  0x74   :  { %496 = vmatprep.mubr.f32.mxu0 %v3344_v0 }
  0x77   :  { %2660 = vmatmul.mubr.msk.f32.gmra.mrb[2].mxu0 %vm91_vm3, %v380_v57  ;;  %v4525_v57 = vsub.s32 0, %v3635_v56 }
  0x78   :  { %502 = vmatprep.mubr.f32.mxu0 %v3344_v0 }
  0x7b   :  { %2661 = vmatmul.mubr.msk.f32.gmra.mrb[4].mxu0 %vm91_vm3, %v381_v58  ;;  %v555_v58 = vld [vmem:[%s4518_s3] sm:$0x3]  ;;  %s3347_s3 = smov 120  }
  0x7c   :  { %508 = vmatprep.mubr.f32.mxu0 %v3344_v0 }
  0x7f   :  { %2662 = vmatmul.mubr.msk.f32.gmra.mrb[6].mxu0 %vm91_vm3, %v382_v59  ;;  %v4524_v59 = vsub.s32 1, %v3635_v56 }
  0x80   :  { %514 = vmatprep.mubr.f32.mxu0 %v3344_v0 }
  0x83   :  { %2663 = vmatmul.mubr.msk.f32.gmra.mrb[8].mxu0 %vm91_vm3, %v383_v60  ;;  %v3644_v60 = vrot.slane %v555_v58, %v4525_v57 }
  0x84   :  { %520 = vmatprep.mubr.f32.mxu0 %v3344_v0 }
  0x87   :  { %2664 = vmatmul.mubr.msk.f32.gmra.mrb[10].mxu0 %vm91_vm3, %v384_v61  ;;  %v3648_v61 = vrot.slane %v555_v58, %v4524_v59 }
  0x88   :  { %526 = vmatprep.mubr.f32.mxu0 %v3344_v0 }
  0x8b   :  { %2665 = vmatmul.mubr.msk.f32.gmra.mrb[12].mxu0 %vm91_vm3, %v385_v62  ;;  %v985_v62 = vld [vmem:[#allocation2 + $0x2d8] sm:$0xff] }
  0x8c   :  { %532 = vmatprep.mubr.f32.mxu0 %v3344_v0  ;;  %v2757_v0 = vpack.c.bf16 %v955_v8, %v953_v7  ;;  %v2791_v7 = vpack.c.bf16 %v986_v4, %v984_v3  ;;  %v1000_v3 = vld [vmem:[#allocation2 + $0x350] sm:$0xff] }
  0x8e   :  { %2758 = vmatprep.subr.bf16.mxu1 %v2757_v0  ;;  %v991_v0 = vld [vmem:[#allocation2 + $0x308] sm:$0xff] }
  0x8f   :  { %2666 = vmatmul.mubr.msk.f32.gmra.mrb[14].mxu0 %vm91_vm3, %v386_v63  ;;  %2760 = vmatpush1.bf16.msra.mxu1 %v2759_v14  ;;  %v987_v63 = vld [vmem:[#allocation2 + $0x2e8] sm:$0xff]  ;;  %v2793_v11 = vpack.c.bf16 %v991_v0, %v989_v9 }
  0x90   :  { %2762 = vmatprep.subr.bf16.mxu1 %v2761_v15  ;;  %v2789_v2 = vpack.c.bf16 %v987_v63, %v985_v62 }
  0x93   :  { %2764 = vmatpush1.bf16.msra.mxu1 %v2763_v20 }
  0x94   :  { %2766 = vmatprep.subr.bf16.mxu1 %v2765_v21  ;;  %v993_v21 = vld [vmem:[#allocation2 + $0x318] sm:$0xff] }
  0x95   :  { %v2797_v25 = vpack.c.bf16 %v995_v22, %v993_v21 }
  0x97   :  { %2768 = vmatpush1.bf16.msra.mxu1 %v2767_v26  ;;  %v992_v26 = vld [vmem:[#allocation2 + $0x310] sm:$0xff] }
  0x98   :  { %2770 = vmatprep.subr.bf16.mxu1 %v2769_v27  ;;  %v994_v27 = vld [vmem:[#allocation2 + $0x320] sm:$0xff] }
  0x9b   :  { %2772 = vmatpush1.bf16.msra.mxu1 %v2771_v32  ;;  %v2799_v32 = vpack.c.bf16 %v994_v27, %v992_v26  ;;  %v771_v26 = vld [vmem:[%s4516_s1 + $0x20] sm:$0xff]  ;;  %v770_v27 = vld [vmem:[%s4516_s1 + $0x18] sm:$0xff] }
  0x9c   :  { %2774 = vmatprep.subr.bf16.mxu1 %v2773_v33 }
  0x9f   :  { %2776 = vmatpush1.bf16.msra.mxu1 %v2775_v38  ;;  %v997_v38 = vld [vmem:[#allocation2 + $0x338] sm:$0xff] }
  0xa0   :  { %2778 = vmatprep.subr.bf16.mxu1 %v2777_v39  ;;  %v999_v39 = vld [vmem:[#allocation2 + $0x348] sm:$0xff] }
  0xa3   :  { %2780 = vmatpush1.bf16.msra.mxu1 %v2779_v44  ;;  %v2801_v44 = vpack.c.bf16 %v999_v39, %v997_v38 }
  0xa4   :  { %2782 = vmatprep.subr.bf16.mxu1 %v2781_v45  ;;  %v996_v45 = vld [vmem:[#allocation2 + $0x330] sm:$0xff] }
  0xa7   :  { %2784 = vmatpush1.bf16.msra.mxu1 %v2783_v50 }
  0xa8   :  { %2786 = vmatprep.subr.bf16.mxu1 %v2785_v51  ;;  %v2803_v51 = vpack.c.bf16 %v998_v46, %v996_v45 }
  0xab   :  { %2788 = vmatpush1.bf16.msra.mxu1 %v2787_v54  ;;  %v1001_v54 = vld [vmem:[#allocation2 + $0x358] sm:$0xff] }
  0xac   :  { %2790 = vmatprep.subr.bf16.mxu1 %v2789_v2 }
  0xaf   :  { %2792 = vmatpush1.bf16.msra.mxu1 %v2791_v7 }
  0xb0   :  { %2794 = vmatprep.subr.bf16.mxu1 %v2793_v11 }
  0xb3   :  { %2796 = vmatpush1.bf16.msra.mxu1 %v2795_v17  ;;  %v896_v17 = vld [vmem:[#allocation2 + $0x18] sm:$0xff] }
  0xb4   :  { %2798 = vmatprep.subr.bf16.mxu1 %v2797_v25 }
  0xb7   :  { %2800 = vmatpush1.bf16.msra.mxu1 %v2799_v32 }
  0xb8   :  { %2802 = vmatprep.subr.bf16.mxu1 %v2801_v44 }
  0xbb   :  { %2804 = vmatpush1.bf16.msra.mxu1 %v2803_v51 }
  0xbc   :  { %1113 = vmatprep.subr.mxu1 %v1001_v54 }
  0xbf   :  { %1114 = vmatpush1.msra.mxu1 %v1000_v3 }
 0x146   :  { %v492_v1 = vpop.f32.mrb[0].mxu0 }
 0x147   :  { %v567_v5 = vadd.f32 %v3644_v60, %v492_v1  ;;  %v494_v6 = vpop.f32.mrb[1].mxu0 }
 0x148   :  { %v568_v8 = vadd.f32 %v3648_v61, %v494_v6 }
 0x149   :  { %v583_v14 = vmax.f32 %v567_v5, 0.0 }
 0x14a   :  { %v498_v10 = vpop.f32.mrb[2].mxu0  ;;  %v584_v18 = vmax.f32 %v568_v8, 0.0 }
 0x14b   :  { %v569_v15 = vadd.f32 %v3644_v60, %v498_v10  ;;  %v500_v16 = vpop.f32.mrb[3].mxu0  ;;  %v616_v28 = vrot.slane %v583_v14, 1  ;;  %v769_v10 = vld [vmem:[%s4516_s1 + $0x10] sm:$0xff] }
 0x14c   :  { %v570_v19 = vadd.f32 %v3648_v61, %v500_v16  ;;  %v619_v33 = vrot.slane %v584_v18, 1  ;;  %v894_v16 = vld [vmem:[#allocation2 + $0x8] sm:$0xff] }
 0x14d   :  { %v585_v20 = vmax.f32 %v569_v15, 0.0  ;;  %v2805_v22 = vpack.c.bf16 %v896_v17, %v894_v16 }
 0x14e   :  { %v586_v23 = vmax.f32 %v570_v19, 0.0  ;;  %v504_v24 = vpop.f32.mrb[4].mxu0 }
 0x14f   :  { %v617_v29 = vrot.slane %v585_v20, 1  ;;  %v571_v30 = vadd.f32 %v3644_v60, %v504_v24  ;;  %v506_v31 = vpop.f32.mrb[5].mxu0  ;;  %2806 = vmatprep.subr.bf16.mxu1 %v2805_v22 }
 0x150   :  { %v620_v34 = vrot.slane %v586_v23, 1  ;;  %v572_v35 = vadd.f32 %v3648_v61, %v506_v31 }
 0x151   :  { %v587_v36 = vmax.f32 %v571_v30, 0.0  ;;  %v618_v37 = vsel %vm615_vm4, %v616_v28, %v617_v29 }
 0x152   :  { %v588_v40 = vmax.f32 %v572_v35, 0.0  ;;  %v510_v41 = vpop.f32.mrb[6].mxu0  ;;  %v3657_v42 = vmax.f32 %v583_v14, %v618_v37  ;;  %v621_v43 = vsel %vm615_vm4, %v619_v33, %v620_v34 }
 0x153   :  { %v622_v47 = vrot.slane %v587_v36, 1  ;;  %v573_v48 = vadd.f32 %v3644_v60, %v510_v41  ;;  %v512_v49 = vpop.f32.mrb[7].mxu0  ;;  %v3661_v50 = vmax.f32 %v584_v18, %v621_v43  ;;  %v772_v41 = vld [vmem:[%s4516_s1 + $0x28] sm:$0xff] }
 0x154   :  { %v624_v52 = vrot.slane %v588_v40, 1  ;;  %v574_v53 = vadd.f32 %v3648_v61, %v512_v49  ;;  %694 = vrot.lane.b32.xlu1 %v3657_v42, %s3347_s3 }
 0x155   :  { %v589_v55 = vmax.f32 %v573_v48, 0.0  ;;  %v623_v58 = vsel %vm615_vm4, %v617_v29, %v622_v47 }
 0x156   :  { %v590_v62 = vmax.f32 %v574_v53, 0.0  ;;  %v516_v63 = vpop.f32.mrb[8].mxu0  ;;  %v3667_v1 = vmax.f32 %v585_v20, %v623_v58  ;;  %v625_v2 = vsel %vm615_vm4, %v620_v34, %v624_v52  ;;  %v774_v58 = vld [vmem:[%s4516_s1 + $0x38] sm:$0x1] }
 0x157   :  { %v626_v4 = vrot.slane %v589_v55, 1  ;;  %v575_v5 = vadd.f32 %v3644_v60, %v516_v63  ;;  %v518_v6 = vpop.f32.mrb[9].mxu0  ;;  %v3671_v7 = vmax.f32 %v586_v23, %v625_v2 }
 0x158   :  { %v628_v8 = vrot.slane %v590_v62, 1  ;;  %v576_v9 = vadd.f32 %v3648_v61, %v518_v6  ;;  %696 = vrot.lane.b32.xlu1 %v3661_v50, %s3347_s3  ;;  %698 = vrot.lane.b32.xlu0 %v3667_v1, %s3347_s3 }
 0x159   :  { %v591_v0 = vmax.f32 %v575_v5, 0.0  ;;  %v627_v11 = vsel %vm615_vm4, %v622_v47, %v626_v4 }
 0x15a   :  { %v592_v12 = vmax.f32 %v576_v9, 0.0  ;;  %v522_v13 = vpop.f32.mrb[10].mxu0  ;;  %v3682_v14 = vmax.f32 %v587_v36, %v627_v11  ;;  %v629_v15 = vsel %vm615_vm4, %v624_v52, %v628_v8  ;;  %v778_v11 = vpop.permute.xlu0 %777 }
 0x15b   :  { %v630_v18 = vrot.slane %v591_v0, 1  ;;  %v577_v19 = vadd.f32 %v3644_v60, %v522_v13  ;;  %v524_v20 = vpop.f32.mrb[11].mxu0  ;;  %v3686_v21 = vmax.f32 %v588_v40, %v629_v15  ;;  %v773_v40 = vld [vmem:[%s4516_s1 + $0x30] sm:$0xff] }
 0x15c   :  { %v632_v23 = vrot.slane %v592_v12, 1  ;;  %v578_v24 = vadd.f32 %v3648_v61, %v524_v20  ;;  %787 = vperm.xlu0 %3259, %v769_v10   ;;  %700 = vrot.lane.b32.xlu1 %v3671_v7, %s3347_s3 }
 0x15d   :  { %v593_v25 = vmax.f32 %v577_v19, 0.0  ;;  %v631_v28 = vsel %vm615_vm4, %v626_v4, %v630_v18 }
 0x15e   :  { %v594_v29 = vmax.f32 %v578_v24, 0.0  ;;  %v528_v30 = vpop.f32.mrb[12].mxu0  ;;  %v633_v31 = vsel %vm615_vm4, %v628_v8, %v632_v23  ;;  %v3699_v32 = vmax.f32 %v589_v55, %v631_v28  ;;  %v783_v13 = vpop.permute.xlu0 %782 }
 0x15f   :  { %v634_v33 = vrot.slane %v593_v25, 1  ;;  %v579_v34 = vadd.f32 %v3644_v60, %v528_v30  ;;  %v530_v35 = vpop.f32.mrb[13].mxu0  ;;  %v3702_v36 = vmax.f32 %v590_v62, %v633_v31 }
 0x160   :  { %v636_v37 = vrot.slane %v594_v29, 1  ;;  %v580_v38 = vadd.f32 %v3648_v61, %v530_v35  ;;  %797 = vperm.xlu0 %3259, %v771_v26   ;;  %792 = vperm.xlu1 %3260, %v770_v27  }
 0x161   :  { %v595_v39 = vmax.f32 %v579_v34, 0.0  ;;  %v635_v43 = vsel %vm615_vm4, %v630_v18, %v634_v33  ;;  %v895_v34 = vld [vmem:[#allocation2 + $0x10] sm:$0xff] }
 0x162   :  { %v596_v44 = vmax.f32 %v580_v38, 0.0  ;;  %v534_v45 = vpop.f32.mrb[14].mxu0  ;;  %v3712_v46 = vmax.f32 %v591_v0, %v635_v43  ;;  %v637_v47 = vsel %vm615_vm4, %v632_v23, %v636_v37  ;;  %v900_v38 = vld [vmem:[#allocation2 + $0x38] sm:$0xff] }
 0x163   :  { %v638_v48 = vrot.slane %v595_v39, 1  ;;  %v581_v49 = vadd.f32 %v3644_v60, %v534_v45  ;;  %v536_v51 = vpop.f32.mrb[15].mxu0  ;;  %v3716_v52 = vmax.f32 %v592_v12, %v637_v47 }
 0x164   :  { %v640_v53 = vrot.slane %v596_v44, 1  ;;  %v582_v54 = vadd.f32 %v3648_v61, %v536_v51  ;;  %807 = vperm.xlu0 %3259, %v773_v40   ;;  %802 = vperm.xlu1 %3260, %v772_v41   ;;  %v897_v51 = vld [vmem:[#allocation2 + $0x20] sm:$0xff] }
 0x165   :  { %v597_v55 = vmax.f32 %v581_v49, 0.0  ;;  %v639_v62 = vsel %vm615_vm4, %v634_v33, %v638_v48 }
 0x166   :  { %v598_v63 = vmax.f32 %v582_v54, 0.0  ;;  %v641_v2 = vsel %vm615_vm4, %v636_v37, %v640_v53  ;;  %v3724_v3 = vmax.f32 %v593_v25, %v639_v62  ;;  %v898_v37 = vld [vmem:[#allocation2 + $0x28] sm:$0xff]  ;;  %v904_v62 = vld [vmem:[#allocation2 + $0x58] sm:$0xff] }
 0x167   :  { %v642_v60 = vrot.slane %v597_v55, 1  ;;  %v3726_v4 = vmax.f32 %v594_v29, %v641_v2  ;;  %v2809_v49 = vpack.c.bf16 %v900_v38, %v898_v37 }
 0x168   :  { %v644_v5 = vrot.slane %v598_v63, 1  ;;  %812 = vperm.xlu1 %3260, %v774_v58   ;;  %702 = vrot.lane.b32.xlu0 %v3682_v14, %s3347_s3  ;;  %v902_v58 = vld [vmem:[#allocation2 + $0x48] sm:$0xff] }
 0x169   :  { %v643_v61 = vsel %vm615_vm4, %v638_v48, %v642_v60  ;;  %v3752_v0 = vmax.f32 %v597_v55, %v642_v60  ;;  %v2813_v60 = vpack.c.bf16 %v904_v62, %v902_v58  ;;  %v3826_v58 = vld [vmem:[#allocation2 + $0xf8] sm:$0xff]  ;;  %v3828_v62 = vld [vmem:[#allocation2 + $0xe0] sm:$0xff] }
 0x16a   :  { %v3731_v6 = vmax.f32 %v595_v39, %v643_v61  ;;  %v645_v8 = vsel %vm615_vm4, %v640_v53, %v644_v5  ;;  %v3758_v10 = vmax.f32 %v598_v63, %v644_v5  ;;  %v899_v53 = vld [vmem:[#allocation2 + $0x30] sm:$0xff]  ;;  %v901_v5 = vld [vmem:[#allocation2 + $0x40] sm:$0xff] }
 0x16b   :  { %v3734_v9 = vmax.f32 %v596_v44, %v645_v8  ;;  %v2811_v2 = vpack.c.bf16 %v899_v53, %v897_v51  ;;  %v903_v61 = vld [vmem:[#allocation2 + $0x50] sm:$0xff]  ;;  %v906_v8 = vld [vmem:[#allocation2 + $0x68] sm:$0xff]  ;;  %v917_v51 = vld [vmem:[#allocation2 + $0xc0] sm:$0xff] }
 0x16c   :  { %704 = vrot.lane.b32.xlu1 %v3686_v21, %s3347_s3  ;;  %708 = vrot.lane.b32.xlu0 %v3702_v36, %s3347_s3  ;;  %v919_v53 = vld [vmem:[#allocation2 + $0xd0] sm:$0xff] }
 0x170   :  { %706 = vrot.lane.b32.xlu1 %v3699_v32, %s3347_s3  ;;  %710 = vrot.lane.b32.xlu0 %v3712_v46, %s3347_s3 }
 0x174   :  { %712 = vrot.lane.b32.xlu1 %v3716_v52, %s3347_s3  ;;  %716 = vrot.lane.b32.xlu0 %v3726_v4, %s3347_s3 }
 0x178   :  { %714 = vrot.lane.b32.xlu1 %v3724_v3, %s3347_s3  ;;  %718 = vrot.lane.b32.xlu0 %v3731_v6, %s3347_s3 }
 0x17c   :  { %722 = vrot.lane.b32.xlu0 %v3752_v0, %s3347_s3  ;;  %720 = vrot.lane.b32.xlu1 %v3734_v9, %s3347_s3 }
 0x180   :  { %724 = vrot.lane.b32.xlu1 %v3758_v10, %s3347_s3 }
 0x1c6   :  { %v695_v12 = vpop.permute.xlu1 %694 }
 0x1ca   :  { %v697_v15 = vpop.permute.xlu1 %696  ;;  %v699_v22 = vpop.permute.xlu0 %698 }
 0x1cb   :  { %v727_v16 = vsel %vm726_vm5, %v695_v12, %v697_v15  ;;  %v752_v17 = vmax.f32 %v3661_v50, %v697_v15  ;;  %v2815_v15 = vpack.c.bf16 %v903_v61, %v901_v5  ;;  %v3830_v61 = vld [vmem:[#allocation2 + $0xf0] sm:$0xff] }
 0x1cc   :  { %v751_v18 = vmax.f32 %v3657_v42, %v727_v16 }
 0x1cd   :  { %v816_v19 = vmul.f32 %v778_v11, %v752_v17  ;;  %v905_v17 = vld [vmem:[#allocation2 + $0x60] sm:$0xff] }
 0x1ce   :  { %v815_v20 = vmul.f32 %v778_v11, %v751_v18  ;;  %v701_v23 = vpop.permute.xlu1 %700  ;;  %v908_v11 = vld [vmem:[#allocation2 + $0x78] sm:$0xff]  ;;  %v907_v18 = vld [vmem:[#allocation2 + $0x70] sm:$0xff] }
 0x1cf   :  { %v849_v24 = vrot.slane %v816_v19, 6  ;;  %v728_v25 = vsel %vm726_vm5, %v699_v22, %v701_v23  ;;  %v754_v26 = vmax.f32 %v3671_v7, %v701_v23  ;;  %v893_v7 = vld [vmem:[#allocation2] sm:$0xff]  ;;  %v2817_v16 = vpack.c.bf16 %v908_v11, %v906_v8  ;;  %v910_v19 = vld [vmem:[#allocation2 + $0x88] sm:$0xff]  ;;  %v3834_v11 = vld [vmem:[#allocation2 + $0x118] sm:$0xff] }
 0x1d0   :  { %v3767_v27 = vrot.slane %v815_v20, 6  ;;  %v753_v28 = vmax.f32 %v3667_v1, %v728_v25  ;;  %v2807_v47 = vpack.c.bf16 %v895_v34, %v893_v7  ;;  %v912_v20 = vld [vmem:[#allocation2 + $0x98] sm:$0xff]  ;;  %v914_v7 = vld [vmem:[#allocation2 + $0xa8] sm:$0xff] }
 0x1d1   :  { %v3770_v29 = vmul.f32 %v783_v13, %v754_v26  ;;  %v3773_v50 = vsel %vm847_vm6, 0.0, %v849_v24  ;;  %v2821_v25 = vpack.c.bf16 %v912_v20, %v910_v19  ;;  %v909_v26 = vld [vmem:[#allocation2 + $0x80] sm:$0xff]  ;;  %v916_v34 = vld [vmem:[#allocation2 + $0xb8] sm:$0xff]  ;;  %v3832_v8 = vld [vmem:[#allocation2 + $0x108] sm:$0xff] }
 0x1d2   :  { %v3775_v42 = vmul.f32 %v783_v13, %v753_v28  ;;  %v3781_v33 = vsel %vm847_vm6, 0.0, %v3767_v27  ;;  %v1009_v35 = vrot.slane %v3773_v50, 2  ;;  %v1362_v41 = vrot.slane %v3773_v50, 4  ;;  %v911_v28 = vld [vmem:[#allocation2 + $0x90] sm:$0xff]  ;;  %v3839_v19 = vld [vmem:[#allocation2 + $0x100] sm:$0xff] }
 0x1d3   :  { %v852_v30 = vrot.slane %v3770_v29, 6  ;;  %v1006_v44 = vrot.slane %v3781_v33, 2  ;;  %v2823_v38 = vpack.c.bf16 %v911_v28, %v909_v26  ;;  %v3841_v20 = vld [vmem:[#allocation2 + $0x110] sm:$0xff]  ;;  %v3846_v26 = vld [vmem:[#allocation2 + $0x138] sm:$0xff]  ;;  %v3848_v28 = vld [vmem:[#allocation2 + $0x120] sm:$0xff] }
 0x1d4   :  { %v850_v31 = vrot.slane %v3775_v42, 6 }
 0x1d5   :  { %v3786_v1 = vsel %vm847_vm6, %v849_v24, %v852_v30  ;;  %v2819_v24 = vpack.c.bf16 %v907_v18, %v905_v17 }
 0x1d6   :  { %v1010_v39 = vrot.slane %v3786_v1, 2  ;;  %v3794_v40 = vsel %vm847_vm6, %v3767_v27, %v850_v31  ;;  %v1363_v43 = vrot.slane %v3786_v1, 4 }
 0x1d7   :  { %v1007_v45 = vrot.slane %v3794_v40, 2 }
 0x1d8   :  { %v1011_v48 = vsel %vm116_vm0, %v1009_v35, %v1010_v39  ;;  %v3806_v54 = vsel %vm1358_vm8, %v1362_v41, %v1363_v43  ;;  %v2825_v41 = vpack.c.bf16 %v916_v34, %v914_v7  ;;  %v3850_v7 = vld [vmem:[#allocation2 + $0x130] sm:$0xff]  ;;  %v2831_v34 = vpack.c.bf16 %v919_v53, %v917_v51 }
 0x1d9   :  { %2667 = vmatprep.mubr.msk.f32.mxu1 %vm1044_vm7, %v1011_v48  ;;  %v1008_v55 = vsel %vm116_vm0, %v1006_v44, %v1007_v45  ;;  %v913_v44 = vld [vmem:[#allocation2 + $0xa0] sm:$0xff]  ;;  %v918_v48 = vld [vmem:[#allocation2 + $0xc8] sm:$0xff]  ;;  %v2837_v51 = vpack.c.bf16 %v3834_v11, %v3832_v8  ;;  %v2839_v53 = vpack.c.bf16 %v3841_v20, %v3839_v19  ;;  %v2843_v11 = vpack.c.bf16 %v3850_v7, %v3848_v28 }
 0x1da   :  { %1126 = vmatmul.mubr.f32.vlgmr.msra.gmra.mrb[0].mxu1 %v1008_v55  ;;  %v3824_v55 = vld [vmem:[#allocation2 + $0xe8] sm:$0xff] }
 0x1db   :  { %v3812_v63 = vpop.permute.xlu0 %787  ;;  %2808 = vmatpush1.bf16.msra.mxu1 %v2807_v47  ;;  %v915_v47 = vld [vmem:[#allocation2 + $0xb0] sm:$0xff] }
 0x1dc   :  { %2810 = vmatprep.subr.bf16.mxu1 %v2809_v49  ;;  %v920_v49 = vld [vmem:[#allocation2 + $0xd8] sm:$0xff]  ;;  %v2827_v5 = vpack.c.bf16 %v915_v47, %v913_v44 }
 0x1dd   :  { %v2829_v18 = vpack.c.bf16 %v920_v49, %v918_v48  ;;  %v2835_v49 = vpack.c.bf16 %v3830_v61, %v3828_v62 }
 0x1df   :  { %v3814_v12 = vpop.permute.xlu0 %797  ;;  %v3816_v13 = vpop.permute.xlu1 %792  ;;  %2812 = vmatpush1.bf16.msra.mxu1 %v2811_v2 }
 0x1e0   :  { %2814 = vmatprep.subr.bf16.mxu1 %v2813_v60 }
 0x1e3   :  { %v3818_v22 = vpop.permute.xlu0 %807  ;;  %v3820_v23 = vpop.permute.xlu1 %802  ;;  %2816 = vmatpush1.bf16.msra.mxu1 %v2815_v15 }
 0x1e4   :  { %2818 = vmatprep.subr.bf16.mxu1 %v2817_v16 }
 0x1e7   :  { %v3822_v35 = vpop.permute.xlu1 %812  ;;  %v703_v37 = vpop.permute.xlu0 %702  ;;  %2820 = vmatpush1.bf16.msra.mxu1 %v2819_v24  ;;  %v3843_v24 = vld [vmem:[#allocation2 + $0x128] sm:$0xff] }
 0x1e8   :  { %2822 = vmatprep.subr.bf16.mxu1 %v2821_v25  ;;  %v2841_v62 = vpack.c.bf16 %v3846_v26, %v3843_v24 }
 0x1eb   :  { %v705_v2 = vpop.permute.xlu1 %704  ;;  %v709_v60 = vpop.permute.xlu0 %708  ;;  %2824 = vmatpush1.bf16.msra.mxu1 %v2823_v38  ;;  %v3858_v38 = vld [vmem:[#allocation2 + $0x148] sm:$0xff] }
 0x1ec   :  { %v729_v15 = vsel %vm726_vm5, %v703_v37, %v705_v2  ;;  %v756_v16 = vmax.f32 %v3686_v21, %v705_v2  ;;  %v758_v17 = vmax.f32 %v3702_v36, %v709_v60  ;;  %2826 = vmatprep.subr.bf16.mxu1 %v2825_v41  ;;  %v2833_v37 = vpack.c.bf16 %v3826_v58, %v3824_v55  ;;  %v3860_v41 = vld [vmem:[#allocation2 + $0x158] sm:$0xff]  ;;  %v3871_v55 = vld [vmem:[#allocation2 + $0x150] sm:$0xff]  ;;  %v3873_v58 = vld [vmem:[#allocation2 + $0x168] sm:$0xff] }
 0x1ed   :  { %v755_v25 = vmax.f32 %v3682_v14, %v729_v15  ;;  %v3862_v14 = vld [vmem:[#allocation2 + $0x140] sm:$0xff]  ;;  %v3875_v2 = vld [vmem:[#allocation2 + $0x178] sm:$0xff] }
 0x1ee   :  { %v820_v21 = vmul.f32 %v3812_v63, %v756_v16  ;;  %v3854_v36 = vmul.f32 %v3816_v13, %v758_v17  ;;  %v2845_v16 = vpack.c.bf16 %v3860_v41, %v3858_v38 }
 0x1ef   :  { %v819_v44 = vmul.f32 %v3812_v63, %v755_v25  ;;  %v707_v47 = vpop.permute.xlu1 %706  ;;  %v711_v48 = vpop.permute.xlu0 %710  ;;  %2828 = vmatpush1.bf16.msra.mxu1 %v2827_v5  ;;  %v3898_v25 = vld [vmem:[#allocation2 + $0x160] sm:$0xff] }
 0x1f0   :  { %v856_v15 = vrot.slane %v820_v21, 6  ;;  %v860_v63 = vrot.slane %v3854_v36, 6  ;;  %v730_v5 = vsel %vm726_vm5, %v707_v47, %v709_v60  ;;  %2830 = vmatprep.subr.bf16.mxu1 %v2829_v18  ;;  %v2847_v18 = vpack.c.bf16 %v3871_v55, %v3862_v14  ;;  %v3900_v21 = vld [vmem:[#allocation2 + $0x170] sm:$0xff] }
 0x1f1   :  { %v854_v61 = vrot.slane %v819_v44, 6  ;;  %v757_v8 = vmax.f32 %v3699_v32, %v730_v5 }
 0x1f2   :  { %v3889_v17 = vsel %vm847_vm6, %v852_v30, %v856_v15  ;;  %v3892_v60 = vsel %vm847_vm6, %v856_v15, %v860_v63 }
 0x1f3   :  { %v821_v36 = vmul.f32 %v3816_v13, %v757_v8  ;;  %v713_v44 = vpop.permute.xlu1 %712  ;;  %v717_v29 = vpop.permute.xlu0 %716  ;;  %v1014_v30 = vrot.slane %v3889_v17, 2  ;;  %2832 = vmatpush1.bf16.msra.mxu1 %v2831_v34  ;;  %v3907_v47 = vsel %vm847_vm6, %v850_v31, %v854_v61  ;;  %v1018_v15 = vrot.slane %v3892_v60, 2 }
 0x1f4   :  { %v731_v5 = vsel %vm726_vm5, %v711_v48, %v713_v44  ;;  %v760_v59 = vmax.f32 %v3716_v52, %v713_v44  ;;  %v762_v57 = vmax.f32 %v3726_v4, %v717_v29  ;;  %v1012_v13 = vrot.slane %v3907_v47, 2  ;;  %2834 = vmatprep.subr.bf16.mxu1 %v2833_v37 }
 0x1f5   :  { %v858_v8 = vrot.slane %v821_v36, 6  ;;  %v759_v32 = vmax.f32 %v3712_v46, %v731_v5  ;;  %v1015_v42 = vsel %vm116_vm0, %v1010_v39, %v1014_v30  ;;  %v2851_v31 = vpack.c.bf16 %v3900_v21, %v3898_v25 }
 0x1f6   :  { %v824_v34 = vmul.f32 %v3814_v12, %v760_v59  ;;  %v3922_v48 = vmul.f32 %v3820_v23, %v762_v57  ;;  %2668 = vmatprep.mubr.msk.f32.mxu1 %vm1044_vm7, %v1015_v42  ;;  %v1013_v52 = vsel %vm116_vm0, %v1007_v45, %v1012_v13  ;;  %v1367_v46 = vrot.slane %v3889_v17, 4 }
 0x1f7   :  { %v823_v4 = vmul.f32 %v3814_v12, %v759_v32  ;;  %1132 = vmatmul.mubr.f32.gmra.mrb[2].mxu1 %v1013_v52  ;;  %v715_v39 = vpop.permute.xlu1 %714  ;;  %v1019_v37 = vsel %vm116_vm0, %v1014_v30, %v1018_v15  ;;  %v3932_v36 = vsel %vm847_vm6, %v854_v61, %v858_v8  ;;  %v1371_v57 = vrot.slane %v3892_v60, 4  ;;  %v719_v42 = vpop.permute.xlu0 %718 }
 0x1f8   :  { %v864_v59 = vrot.slane %v824_v34, 6  ;;  %v868_v44 = vrot.slane %v3922_v48, 6  ;;  %v732_v5 = vsel %vm726_vm5, %v715_v39, %v717_v29  ;;  %2669 = vmatprep.mubr.msk.f32.mxu1 %vm1044_vm7, %v1019_v37  ;;  %2836 = vmatpush1.bf16.msra.mxu1 %v2835_v49  ;;  %v1016_v45 = vrot.slane %v3932_v36, 2 }
 0x1f9   :  { %v862_v12 = vrot.slane %v823_v4, 6  ;;  %v761_v32 = vmax.f32 %v3724_v3, %v732_v5  ;;  %2838 = vmatprep.subr.bf16.mxu1 %v2837_v51  ;;  %v3943_v61 = vsel %vm1358_vm8, %v1363_v43, %v1367_v46  ;;  %v1365_v30 = vrot.slane %v3907_v47, 4 }
 0x1fa   :  { %v3947_v34 = vsel %vm847_vm6, %v860_v63, %v864_v59  ;;  %v3950_v29 = vsel %vm847_vm6, %v864_v59, %v868_v44  ;;  %v1017_v49 = vsel %vm116_vm0, %v1012_v13, %v1016_v45  ;;  %v3954_v48 = vsel %vm1358_vm8, %v1367_v46, %v1371_v57 }
 0x1fb   :  { %v825_v3 = vmul.f32 %v3820_v23, %v761_v32  ;;  %1138 = vmatmul.mubr.f32.gmra.mrb[4].mxu1 %v1017_v49  ;;  %v721_v51 = vpop.permute.xlu1 %720  ;;  %v1022_v43 = vrot.slane %v3947_v34, 2  ;;  %v3959_v52 = vsel %vm847_vm6, %v858_v8, %v862_v12  ;;  %v1026_v63 = vrot.slane %v3950_v29, 2 }
 0x1fc   :  { %v733_v4 = vsel %vm726_vm5, %v719_v42, %v721_v51  ;;  %v764_v39 = vmax.f32 %v3734_v9, %v721_v51  ;;  %2840 = vmatpush1.bf16.msra.mxu1 %v2839_v53  ;;  %v1020_v13 = vrot.slane %v3959_v52, 2  ;;  %v1369_v23 = vrot.slane %v3932_v36, 4  ;;  %v723_v53 = vpop.permute.xlu0 %722 }
 0x1fd   :  { %v866_v46 = vrot.slane %v825_v3, 6  ;;  %v763_v37 = vmax.f32 %v3731_v6, %v733_v4  ;;  %v1023_v8 = vsel %vm116_vm0, %v1018_v15, %v1022_v43  ;;  %v1027_v59 = vsel %vm116_vm0, %v1022_v43, %v1026_v63  ;;  %2842 = vmatprep.subr.bf16.mxu1 %v2841_v62  ;;  %v944_v43 = vld [vmem:[#allocation2 + $0x198] sm:$0xff] }
 0x1fe   :  { %v828_v9 = vmul.f32 %v3818_v22, %v764_v39  ;;  %2670 = vmatprep.mubr.msk.f32.mxu1 %vm1044_vm7, %v1023_v8  ;;  %v1021_v19 = vsel %vm116_vm0, %v1016_v45, %v1020_v13  ;;  %v3981_v20 = vsel %vm1358_vm8, %v1365_v30, %v1369_v23  ;;  %v1375_v6 = vrot.slane %v3947_v34, 4 }
 0x1ff   :  { %v827_v15 = vmul.f32 %v3818_v22, %v763_v37  ;;  %1144 = vmatmul.mubr.f32.gmra.mrb[6].mxu1 %v1021_v19  ;;  %v725_v5 = vpop.permute.xlu1 %724  ;;  %v3986_v24 = vsel %vm847_vm6, %v862_v12, %v866_v46  ;;  %v1373_v26 = vrot.slane %v3959_v52, 4  ;;  %v1379_v62 = vrot.slane %v3950_v29, 4 }
 0x200   :  { %v872_v45 = vrot.slane %v828_v9, 6  ;;  %v734_v32 = vsel %vm726_vm5, %v723_v53, %v725_v5  ;;  %v766_v42 = vmax.f32 %v3758_v10, %v725_v5  ;;  %2671 = vmatprep.mubr.msk.f32.mxu1 %vm1044_vm7, %v1027_v59  ;;  %2844 = vmatpush1.bf16.msra.mxu1 %v2843_v11  ;;  %v1024_v22 = vrot.slane %v3986_v24, 2  ;;  %v942_v11 = vld [vmem:[#allocation2 + $0x188] sm:$0xff]  ;;  %v943_v59 = vld [vmem:[#allocation2 + $0x190] sm:$0xff] }
 0x201   :  { %v870_v49 = vrot.slane %v827_v15, 6  ;;  %v765_v12 = vmax.f32 %v3752_v0, %v734_v32  ;;  %2846 = vmatprep.subr.bf16.mxu1 %v2845_v16  ;;  %v4002_v3 = vsel %vm1358_vm8, %v1371_v57, %v1375_v6  ;;  %v4005_v10 = vsel %vm1358_vm8, %v1369_v23, %v1373_v26  ;;  %v1307_v32 = vld [vmem:[#allocation2 + $0x378] sm:$0xff] }
 0x202   :  { %v4008_v51 = vsel %vm847_vm6, %v868_v44, %v872_v45  ;;  %v830_v28 = vmul.f32 %v3822_v35, %v766_v42  ;;  %v1025_v7 = vsel %vm116_vm0, %v1020_v13, %v1024_v22  ;;  %v4013_v0 = vsel %vm1358_vm8, %v1375_v6, %v1379_v62 }
 0x203   :  { %v829_v38 = vmul.f32 %v3822_v35, %v765_v12  ;;  %1150 = vmatmul.mubr.f32.gmra.mrb[8].mxu1 %v1025_v7  ;;  %v1030_v41 = vrot.slane %v4008_v51, 2  ;;  %v4018_v16 = vsel %vm847_vm6, %v866_v46, %v870_v49  ;;  %v1377_v57 = vrot.slane %v3986_v24, 4  ;;  %v1304_v12 = vld [vmem:[#allocation2 + $0x360] sm:$0xff]  ;;  %v1309_v7 = vld [vmem:[#allocation2 + $0x388] sm:$0xff] }
 0x204   :  { %v876_v44 = vrot.slane %v830_v28, 6  ;;  %2848 = vmatpush1.bf16.msra.mxu1 %v2847_v18  ;;  %v1028_v4 = vrot.slane %v4018_v16, 2  ;;  %v1383_v39 = vrot.slane %v4008_v51, 4  ;;  %v1381_v13 = vrot.slane %v4018_v16, 4  ;;  %v941_v18 = vld [vmem:[#allocation2 + $0x180] sm:$0xff]  ;;  %v1306_v28 = vld [vmem:[#allocation2 + $0x370] sm:$0xff] }
 0x205   :  { %v874_v35 = vrot.slane %v829_v38, 6  ;;  %v1031_v23 = vsel %vm116_vm0, %v1026_v63, %v1030_v41  ;;  %v4528_v46 = vpack.c.bf16 %v3875_v2, %v3873_v58  ;;  %v2853_v37 = vpack.c.bf16 %v944_v43, %v942_v11  ;;  %v1311_v11 = vld [vmem:[#allocation2 + $0x398] sm:$0xff] }
 0x206   :  { %v4032_v8 = vsel %vm1358_vm8, %v1373_v26, %v1377_v57  ;;  %v877_v14 = vsel %vm847_vm6, %v872_v45, %v876_v44  ;;  %2672 = vmatprep.mubr.msk.f32.mxu1 %vm1044_vm7, %v1031_v23  ;;  %v1029_v55 = vsel %vm116_vm0, %v1024_v22, %v1028_v4  ;;  %v4038_v9 = vsel %vm1358_vm8, %v1379_v62, %v1383_v39  ;;  %v1305_v45 = vld [vmem:[#allocation2 + $0x368] sm:$0xff]  ;;  %v945_v22 = vld [vmem:[#allocation2 + $0x1a0] sm:$0xff] }
 0x207   :  { %2850 = vmatprep.subr.bf16.mxu1 %v4528_v46  ;;  %v4041_v63 = vsel %vm1358_vm8, %v1377_v57, %v1381_v13  ;;  %v4044_v58 = vsel %vm890_vm9, %v877_v14, 0.0  ;;  %1156 = vmatmul.mubr.f32.gmra.mrb[10].mxu1 %v1029_v55  ;;  %v4047_v2 = vsel %vm847_vm6, %v870_v49, %v874_v35  ;;  %v2855_v5 = vpack.c.bf16 %v943_v59, %v941_v18  ;;  %v1310_v57 = vld [vmem:[#allocation2 + $0x390] sm:$0xff]  ;;  %v1313_v44 = vld [vmem:[#allocation2 + $0x3a8] sm:$0xff]  ;;  %v1319_v46 = vld [vmem:[#allocation2 + $0x3d8] sm:$0xff] }
 0x208   :  { %2852 = vmatpush1.bf16.msra.mxu1 %v2851_v31  ;;  %v1034_v19 = vrot.slane %v4044_v58, 2  ;;  %v4055_v6 = vsel %vm890_vm9, %v4047_v2, 0.0  ;;  %v1387_v53 = vrot.slane %v4044_v58, 4  ;;  %v946_v31 = vld [vmem:[#allocation2 + $0x1a8] sm:$0xff]  ;;  %v2857_v49 = vpack.c.bf16 %v1307_v32, %v1305_v45  ;;  %v1314_v35 = vld [vmem:[#allocation2 + $0x3b0] sm:$0xff]  ;;  %v1316_v14 = vld [vmem:[#allocation2 + $0x3c0] sm:$0xff] }
 0x209   :  { %v1032_v15 = vrot.slane %v4055_v6, 2  ;;  %2854 = vmatprep.subr.bf16.mxu1 %v2853_v37  ;;  %v1385_v26 = vrot.slane %v4055_v6, 4  ;;  %v2859_v43 = vpack.c.bf16 %v1306_v28, %v1304_v12  ;;  %v2861_v38 = vpack.c.bf16 %v1311_v11, %v1309_v7  ;;  %v1317_v23 = vld [vmem:[#allocation2 + $0x3c8] sm:$0xff]  ;;  %v1318_v55 = vld [vmem:[#allocation2 + $0x3d0] sm:$0xff]  ;;  %v1324_v45 = vld [vmem:[#allocation2 + $0x400] sm:$0xff] }
 0x20a   :  { %v1035_v62 = vsel %vm116_vm0, %v1030_v41, %v1034_v19  ;;  %v4064_v25 = vsel %vm1358_vm8, %v1383_v39, %v1387_v53  ;;  %v1308_v41 = vld [vmem:[#allocation2 + $0x380] sm:$0xff]  ;;  %v1321_v18 = vld [vmem:[#allocation2 + $0x3e8] sm:$0xff]  ;;  %v2871_v59 = vpack.c.bf16 %v1318_v55, %v1316_v14  ;;  %v1326_v32 = vld [vmem:[#allocation2 + $0x410] sm:$0xff] }
 0x20b   :  { %2673 = vmatprep.mubr.msk.f32.mxu1 %vm1044_vm7, %v1035_v62  ;;  %v1033_v21 = vsel %vm116_vm0, %v1028_v4, %v1032_v15  ;;  %v4071_v42 = vsel %vm1358_vm8, %v1381_v13, %v1385_v26  ;;  %v1315_v4 = vld [vmem:[#allocation2 + $0x3b8] sm:$0xff]  ;;  %v2863_v39 = vpack.c.bf16 %v1310_v57, %v1308_v41  ;;  %v1325_v62 = vld [vmem:[#allocation2 + $0x408] sm:$0xff]  ;;  %v1328_v12 = vld [vmem:[#allocation2 + $0x420] sm:$0xff] }
 0x20c   :  { %1162 = vmatmul.mubr.f32.gmra.mrb[12].mxu1 %v1033_v21  ;;  %v2865_v13 = vpack.c.bf16 %v1315_v4, %v1313_v44  ;;  %v1330_v28 = vld [vmem:[#allocation2 + $0x430] sm:$0xff]  ;;  %v1333_v7 = vld [vmem:[#allocation2 + $0x448] sm:$0xff]  ;;  %v1336_v44 = vld [vmem:[#allocation2 + $0x460] sm:$0xff] }
 0x20d   :  { %2674 = vmatprep.mubr.msk.f32.mxu1 %vm1044_vm7, %v1034_v19  ;;  %2856 = vmatpush1.bf16.msra.mxu1 %v2855_v5  ;;  %v1322_v5 = vld [vmem:[#allocation2 + $0x3f0] sm:$0xff]  ;;  %v2883_v11 = vpack.c.bf16 %v1330_v28, %v1328_v12  ;;  %v1337_v41 = vld [vmem:[#allocation2 + $0x468] sm:$0xff]  ;;  %v1344_v14 = vld [vmem:[#allocation2 + $0x4a0] sm:$0xff] }
 0x20e   :  { %1242 = vmatprep.subr.mxu1 %v946_v31  ;;  %v1338_v4 = vld [vmem:[#allocation2 + $0x470] sm:$0xff]  ;;  %v2012_v6 = vld [vmem:[#allocation5 + $0x1c8] sm:$0xff]  ;;  %v2013_v28 = vld [vmem:[#allocation5 + $0x1d0] sm:$0xff] }
 0x20f   :  { %v1346_v55 = vld [vmem:[#allocation2 + $0x4b0] sm:$0xff] }
 0x210   :  { %1168 = vmatmul.mubr.f32.gmra.mrb[14].mxu1 %v1032_v15  ;;  %v1320_v15 = vld [vmem:[#allocation2 + $0x3e0] sm:$0xff] }
 0x211   :  { %2675 = vmatprep.mubr.msk.f32.mxu1 %vm1044_vm7, %v3773_v50  ;;  %1243 = vmatpush1.msra.mxu1 %v945_v22  ;;  %v1312_v50 = vld [vmem:[#allocation2 + $0x3a0] sm:$0xff]  ;;  %v2875_v21 = vpack.c.bf16 %v1322_v5, %v1320_v15  ;;  %v1329_v22 = vld [vmem:[#allocation2 + $0x428] sm:$0xff]  ;;  %v1355_v5 = vld [vmem:[#allocation2 + $0x4f8] sm:$0xff] }
 0x212   :  { %2858 = vmatprep.subr.bf16.mxu1 %v2857_v49  ;;  %v2867_v37 = vpack.c.bf16 %v1314_v35, %v1312_v50  ;;  %v2879_v49 = vpack.c.bf16 %v1326_v32, %v1324_v45  ;;  %v1340_v50 = vld [vmem:[#allocation2 + $0x480] sm:$0xff]  ;;  %v1342_v35 = vld [vmem:[#allocation2 + $0x490] sm:$0xff]  ;;  %v1353_v15 = vld [vmem:[#allocation2 + $0x4e8] sm:$0xff] }
 0x213   :  { %v1357_v32 = vld [vmem:[#allocation2 + $0x508] sm:$0xff] }
 0x214   :  { %2677 = vmatmul.mubr.msk.f32.vlgmr.msra.gmra.mrb[0].mxu1 %vm2676_vm10, %v3767_v27  ;;  %v2869_v27 = vpack.c.bf16 %v1319_v46, %v1317_v23  ;;  %v1345_v23 = vld [vmem:[#allocation2 + $0x4a8] sm:$0xff]  ;;  %v1347_v46 = vld [vmem:[#allocation2 + $0x4b8] sm:$0xff] }
 0x215   :  { %2860 = vmatpush1.bf16.msra.mxu1 %v2859_v43  ;;  %2678 = vmatprep.mubr.msk.f32.mxu1 %vm1044_vm7, %v3786_v1  ;;  %v1323_v1 = vld [vmem:[#allocation2 + $0x3f8] sm:$0xff]  ;;  %v1332_v43 = vld [vmem:[#allocation2 + $0x440] sm:$0xff] }
 0x216   :  { %2862 = vmatprep.subr.bf16.mxu1 %v2861_v38  ;;  %v2873_v19 = vpack.c.bf16 %v1323_v1, %v1321_v18  ;;  %v1334_v38 = vld [vmem:[#allocation2 + $0x450] sm:$0xff]  ;;  %v1349_v18 = vld [vmem:[#allocation2 + $0x4c8] sm:$0xff]  ;;  %v1351_v1 = vld [vmem:[#allocation2 + $0x4d8] sm:$0xff] }
 0x217   :  { %v2887_v57 = vpack.c.bf16 %v1334_v38, %v1332_v43  ;;  %v2015_v38 = vld [vmem:[#allocation5 + $0x1e0] sm:$0xff] }
 0x218   :  { %1261 = vmatmul.mubr.f32.gmra.mrb[2].mxu1 %v3794_v40 }
 0x219   :  { %2864 = vmatpush1.bf16.msra.mxu1 %v2863_v39  ;;  %2679 = vmatprep.mubr.msk.f32.mxu1 %vm1044_vm7, %v3889_v17  ;;  %v1327_v17 = vld [vmem:[#allocation2 + $0x418] sm:$0xff]  ;;  %v1341_v39 = vld [vmem:[#allocation2 + $0x488] sm:$0xff] }
 0x21a   :  { %2866 = vmatprep.subr.bf16.mxu1 %v2865_v13  ;;  %v2877_v31 = vpack.c.bf16 %v1327_v17, %v1325_v62  ;;  %v2891_v13 = vpack.c.bf16 %v1338_v4, %v1336_v44  ;;  %v2905_v17 = vpack.c.bf16 %v1355_v5, %v1353_v15  ;;  %v2017_v4 = vld [vmem:[#allocation5 + $0x1f0] sm:$0xff]  ;;  %v2024_v15 = vld [vmem:[#allocation5 + $0x228] sm:$0xff] }
 0x21b   :  { %v1781_v5 = vld [vmem:[#allocation5 + $0x150] sm:$0xff] }
 0x21c   :  { %1267 = vmatmul.mubr.f32.gmra.mrb[4].mxu1 %v3907_v47  ;;  %v1765_v47 = vld [vmem:[#allocation5 + $0xd0] sm:$0xff] }
 0x21d   :  { %2868 = vmatpush1.bf16.msra.mxu1 %v2867_v37  ;;  %2680 = vmatprep.mubr.msk.f32.mxu1 %vm1044_vm7, %v3892_v60  ;;  %v1331_v60 = vld [vmem:[#allocation2 + $0x438] sm:$0xff]  ;;  %v2895_v37 = vpack.c.bf16 %v1342_v35, %v1340_v50  ;;  %v2019_v35 = vld [vmem:[#allocation5 + $0x200] sm:$0xff] }
 0x21e   :  { %2870 = vmatprep.subr.bf16.mxu1 %v2869_v27  ;;  %v2897_v27 = vpack.c.bf16 %v1347_v46, %v1345_v23  ;;  %v2020_v23 = vld [vmem:[#allocation5 + $0x208] sm:$0xff]  ;;  %v1777_v46 = vld [vmem:[#allocation5 + $0x130] sm:$0xff] }
 0x220   :  { %1273 = vmatmul.mubr.f32.gmra.mrb[6].mxu1 %v3932_v36  ;;  %v2881_v36 = vpack.c.bf16 %v1331_v60, %v1329_v22  ;;  %v1360_v22 = vrot.slane %v3794_v40, 4  ;;  %v1356_v60 = vld [vmem:[#allocation2 + $0x500] sm:$0xff]  ;;  %v2008_v40 = vld [vmem:[#allocation5 + $0x1a8] sm:$0xff] }
 0x221   :  { %2872 = vmatpush1.bf16.msra.mxu1 %v2871_v59  ;;  %2681 = vmatprep.mubr.msk.f32.mxu1 %vm1044_vm7, %v3947_v34  ;;  %v1335_v34 = vld [vmem:[#allocation2 + $0x458] sm:$0xff]  ;;  %v2901_v59 = vpack.c.bf16 %v1351_v1, %v1349_v18  ;;  %v2022_v18 = vld [vmem:[#allocation5 + $0x218] sm:$0xff]  ;;  %v1779_v1 = vld [vmem:[#allocation5 + $0x140] sm:$0xff] }
 0x222   :  { %2874 = vmatprep.subr.bf16.mxu1 %v2873_v19  ;;  %v1350_v19 = vld [vmem:[#allocation2 + $0x4d0] sm:$0xff]  ;;  %v1366_v12 = vsel %vm1358_vm8, %v1360_v22, %v1365_v30 }
 0x224   :  { %1279 = vmatmul.mubr.f32.gmra.mrb[8].mxu1 %v3959_v52  ;;  %v2885_v52 = vpack.c.bf16 %v1335_v34, %v1333_v7  ;;  %v2014_v7 = vld [vmem:[#allocation5 + $0x1d8] sm:$0xff]  ;;  %v1771_v34 = vld [vmem:[#allocation5 + $0x100] sm:$0xff] }
 0x225   :  { %2876 = vmatpush1.bf16.msra.mxu1 %v2875_v21  ;;  %2682 = vmatprep.mubr.msk.f32.mxu1 %vm1044_vm7, %v3950_v29  ;;  %v1339_v29 = vld [vmem:[#allocation2 + $0x478] sm:$0xff]  ;;  %v1352_v21 = vld [vmem:[#allocation2 + $0x4e0] sm:$0xff] }
 0x226   :  { %2878 = vmatprep.subr.bf16.mxu1 %v2877_v31  ;;  %v1354_v31 = vld [vmem:[#allocation2 + $0x4f0] sm:$0xff] }
 0x227   :  { %v2907_v45 = vpack.c.bf16 %v1354_v31, %v1352_v21  ;;  %v2025_v31 = vld [vmem:[#allocation5 + $0x230] sm:$0xff] }
 0x228   :  { %1285 = vmatmul.mubr.f32.gmra.mrb[10].mxu1 %v3986_v24  ;;  %v2889_v24 = vpack.c.bf16 %v1339_v29, %v1337_v41  ;;  %v2016_v41 = vld [vmem:[#allocation5 + $0x1e8] sm:$0xff]  ;;  %v1773_v29 = vld [vmem:[#allocation5 + $0x110] sm:$0xff] }
 0x229   :  { %2880 = vmatpush1.bf16.msra.mxu1 %v2879_v49  ;;  %2683 = vmatprep.mubr.msk.f32.mxu1 %vm1044_vm7, %v4008_v51  ;;  %v1343_v51 = vld [vmem:[#allocation2 + $0x498] sm:$0xff]  ;;  %v1359_v49 = vrot.slane %v3781_v33, 4  ;;  %v2007_v33 = vld [vmem:[#allocation5 + $0x1a0] sm:$0xff] }
 0x22a   :  { %2882 = vmatprep.subr.bf16.mxu1 %v2881_v36  ;;  %v2988_v30 = vpack.c.bf16 %v2008_v40, %v2007_v33  ;;  %v4530_v40 = vsub.s32 1, %v3635_v56 }
 0x22b   :  { %v1361_v36 = vsel %vm1358_vm8, %v1359_v49, %v1360_v22  ;;  %v1784_v22 = vld [vmem:[#allocation5 + $0x168] sm:$0xff] }
 0x22c   :  { %1291 = vmatmul.mubr.f32.gmra.mrb[12].mxu1 %v4018_v16  ;;  %v2893_v16 = vpack.c.bf16 %v1343_v51, %v1341_v39  ;;  %v2018_v39 = vld [vmem:[#allocation5 + $0x1f8] sm:$0xff]  ;;  %v1775_v51 = vld [vmem:[#allocation5 + $0x120] sm:$0xff] }
 0x22d   :  { %2884 = vmatpush1.bf16.msra.mxu1 %v2883_v11  ;;  %2684 = vmatprep.mubr.msk.f32.mxu1 %vm1044_vm7, %v4044_v58  ;;  %v2011_v58 = vld [vmem:[#allocation5 + $0x1c0] sm:$0xff]  ;;  %v1772_v11 = vld [vmem:[#allocation5 + $0x108] sm:$0xff] }
 0x22e   :  { %2886 = vmatprep.subr.bf16.mxu1 %v2885_v52  ;;  %v2997_v52 = vpack.c.bf16 %v2014_v7, %v2013_v28  ;;  %v2919_v43 = vpack.c.bf16 %v1772_v11, %v1771_v34 }
 0x230   :  { %2685 = vmatmul.mubr.msk.f32.gmra.mrb[14].mxu1 %vm890_vm9, %v4047_v2  ;;  %v2899_v2 = vpack.c.bf16 %v1346_v55, %v1344_v14  ;;  %v2021_v55 = vld [vmem:[#allocation5 + $0x210] sm:$0xff] }
 0x231   :  { %2888 = vmatpush1.bf16.msra.mxu1 %v2887_v57  ;;  %2686 = vmatprep.mubr.msk.f32.mxu1 %vm1044_vm7, %v3806_v54  ;;  %v1348_v54 = vld [vmem:[#allocation2 + $0x4c0] sm:$0xff]  ;;  %v1774_v57 = vld [vmem:[#allocation5 + $0x118] sm:$0xff] }
 0x232   :  { %2890 = vmatprep.subr.bf16.mxu1 %v2889_v24  ;;  %v2903_v62 = vpack.c.bf16 %v1350_v19, %v1348_v54  ;;  %v3000_v24 = vpack.c.bf16 %v2016_v41, %v2015_v38  ;;  %v2922_v44 = vpack.c.bf16 %v1774_v57, %v1773_v29  ;;  %v2023_v19 = vld [vmem:[#allocation5 + $0x220] sm:$0xff] }
 0x235   :  { %2892 = vmatpush1.bf16.msra.mxu1 %v2891_v13  ;;  %v1776_v13 = vld [vmem:[#allocation5 + $0x128] sm:$0xff] }
 0x236   :  { %2894 = vmatprep.subr.bf16.mxu1 %v2893_v16  ;;  %v3003_v16 = vpack.c.bf16 %v2018_v39, %v2017_v4  ;;  %v2925_v50 = vpack.c.bf16 %v1776_v13, %v1775_v51  ;;  %v1787_v39 = vld [vmem:[#allocation5 + $0x180] sm:$0xff]  ;;  %v1788_v51 = vld [vmem:[#allocation5 + $0x188] sm:$0xff] }
 0x239   :  { %2896 = vmatpush1.bf16.msra.mxu1 %v2895_v37  ;;  %v1778_v37 = vld [vmem:[#allocation5 + $0x138] sm:$0xff] }
 0x23a   :  { %2898 = vmatprep.subr.bf16.mxu1 %v2897_v27  ;;  %v3006_v27 = vpack.c.bf16 %v2020_v23, %v2019_v35  ;;  %v2928_v14 = vpack.c.bf16 %v1778_v37, %v1777_v46  ;;  %v2031_v35 = vld [vmem:[#allocation5 + $0x260] sm:$0xff]  ;;  %v2032_v23 = vld [vmem:[#allocation5 + $0x268] sm:$0xff] }
 0x23d   :  { %2900 = vmatpush1.bf16.msra.mxu1 %v2899_v2  ;;  %v1780_v2 = vld [vmem:[#allocation5 + $0x148] sm:$0xff] }
 0x23e   :  { %2902 = vmatprep.subr.bf16.mxu1 %v2901_v59  ;;  %v3009_v59 = vpack.c.bf16 %v2022_v18, %v2021_v55  ;;  %v2931_v54 = vpack.c.bf16 %v1780_v2, %v1779_v1  ;;  %v3024_v55 = vpack.c.bf16 %v2032_v23, %v2031_v35 }
 0x241   :  { %2904 = vmatpush1.bf16.msra.mxu1 %v2903_v62  ;;  %v1782_v62 = vld [vmem:[#allocation5 + $0x158] sm:$0xff] }
 0x242   :  { %2906 = vmatprep.subr.bf16.mxu1 %v2905_v17  ;;  %v3012_v17 = vpack.c.bf16 %v2024_v15, %v2023_v19  ;;  %v2934_v21 = vpack.c.bf16 %v1782_v62, %v1781_v5  ;;  %v1789_v15 = vld [vmem:[#allocation5 + $0x190] sm:$0xff]  ;;  %v1790_v5 = vld [vmem:[#allocation5 + $0x198] sm:$0xff] }
 0x245   :  { %2908 = vmatpush1.bf16.msra.mxu1 %v2907_v45  ;;  %v2026_v45 = vld [vmem:[#allocation5 + $0x238] sm:$0xff] }
 0x246   :  { %1465 = vmatprep.subr.mxu1 %v1357_v32  ;;  %v1783_v32 = vld [vmem:[#allocation5 + $0x160] sm:$0xff] }
 0x247   :  { %v2937_v49 = vpack.c.bf16 %v1784_v22, %v1783_v32 }
 0x249   :  { %1466 = vmatpush1.msra.mxu1 %v1356_v60  ;;  %v3015_v60 = vpack.c.bf16 %v2026_v45, %v2025_v31 }
 0x24a   :  { %1478 = vmatmul.mubr.f32.vlgmr.msra.gmra.mrb[0].mxu1 %v1361_v36  ;;  %v1542_v36 = vld [vmem:[%s4520_s5] sm:$0x3]  ;;  %s3349_s5 = smov 112  }
 0x24b   :  { %2687 = vmatprep.mubr.msk.f32.mxu1 %vm1044_vm7, %v3943_v61  ;;  %v3348_v61 = vmov 0.0|0.0  }
 0x24c   :  { %2987 = vmatprep.subr.bf16.mxu1 %v3348_v61  ;;  %2909 = vmatprep.subr.bf16.mxu0 %v3348_v61 }
 0x24d   :  { %2989 = vmatpush1.bf16.msra.mxu1 %v2988_v30 }
 0x24e   :  { %1484 = vmatmul.mubr.f32.gmra.mrb[2].mxu1 %v1366_v12  ;;  %2990 = vmatprep.subr.bf16.mxu1 %v3348_v61  ;;  %v4529_v12 = vsub.s32 0, %v3635_v56 }
 0x24f   :  { %2688 = vmatprep.mubr.msk.f32.mxu1 %vm1044_vm7, %v3954_v48  ;;  %v1766_v48 = vld [vmem:[#allocation5 + $0xd8] sm:$0xff] }
 0x250   :  { %v4157_v33 = vrot.slane %v1542_v36, %v4529_v12 }
 0x252   :  { %1490 = vmatmul.mubr.f32.gmra.mrb[4].mxu1 %v3981_v20  ;;  %v2009_v20 = vld [vmem:[#allocation5 + $0x1b0] sm:$0xff] }
 0x253   :  { %2689 = vmatprep.mubr.msk.f32.mxu1 %vm1044_vm7, %v4002_v3  ;;  %v2010_v3 = vld [vmem:[#allocation5 + $0x1b8] sm:$0xff] }
 0x256   :  { %1496 = vmatmul.mubr.f32.gmra.mrb[6].mxu1 %v4005_v10  ;;  %v2910_v10 = vpack.c.bf16 %v1766_v48, %v1765_v47  ;;  %v4161_v47 = vrot.slane %v1542_v36, %v4530_v40 }
 0x257   :  { %2690 = vmatprep.mubr.msk.f32.mxu1 %vm1044_vm7, %v4013_v0  ;;  %v1767_v0 = vld [vmem:[#allocation5 + $0xe0] sm:$0xff] }
 0x258   :  { %2911 = vmatpush1.bf16.msra.mxu0 %v2910_v10  ;;  %v2027_v10 = vld [vmem:[#allocation5 + $0x240] sm:$0xff] }
 0x259   :  { %2912 = vmatprep.subr.bf16.mxu0 %v3348_v61 }
 0x25a   :  { %1502 = vmatmul.mubr.f32.gmra.mrb[8].mxu1 %v4032_v8  ;;  %v1768_v8 = vld [vmem:[#allocation5 + $0xe8] sm:$0xff] }
 0x25b   :  { %2691 = vmatprep.mubr.msk.f32.mxu1 %vm1044_vm7, %v4038_v9  ;;  %v2991_v9 = vpack.c.bf16 %v2010_v3, %v2009_v20 }
 0x25d   :  { %2992 = vmatpush1.bf16.msra.mxu1 %v2991_v9 }
 0x25e   :  { %1508 = vmatmul.mubr.f32.gmra.mrb[10].mxu1 %v4041_v63  ;;  %v2913_v63 = vpack.c.bf16 %v1768_v8, %v1767_v0  ;;  %2993 = vmatprep.subr.bf16.mxu1 %v3348_v61  ;;  %v2028_v0 = vld [vmem:[#allocation5 + $0x248] sm:$0xff] }
 0x25f   :  { %2692 = vmatprep.mubr.msk.f32.mxu1 %vm1044_vm7, %v4064_v25  ;;  %v2994_v25 = vpack.c.bf16 %v2012_v6, %v2011_v58  ;;  %v3018_v9 = vpack.c.bf16 %v2028_v0, %v2027_v10  ;;  %v1786_v58 = vld [vmem:[#allocation5 + $0x178] sm:$0xff]  ;;  %v2029_v6 = vld [vmem:[#allocation5 + $0x250] sm:$0xff] }
 0x260   :  { %2914 = vmatpush1.bf16.msra.mxu0 %v2913_v63  ;;  %v1785_v63 = vld [vmem:[#allocation5 + $0x170] sm:$0xff] }
 0x261   :  { %2915 = vmatprep.subr.bf16.mxu0 %v3348_v61  ;;  %2995 = vmatpush1.bf16.msra.mxu1 %v2994_v25  ;;  %v2940_v56 = vpack.c.bf16 %v1786_v58, %v1785_v63 }
 0x262   :  { %1514 = vmatmul.mubr.f32.gmra.mrb[12].mxu1 %v4071_v42  ;;  %2996 = vmatprep.subr.bf16.mxu1 %v3348_v61 }
 0x263   :  { %2693 = vmatprep.mubr.msk.f32.mxu1 %vm1044_vm7, %v1387_v53  ;;  %v1769_v53 = vld [vmem:[#allocation5 + $0xf0] sm:$0xff] }
 0x265   :  { %2998 = vmatpush1.bf16.msra.mxu1 %v2997_v52 }
 0x266   :  { %1520 = vmatmul.mubr.f32.gmra.mrb[14].mxu1 %v1385_v26  ;;  %v1770_v26 = vld [vmem:[#allocation5 + $0xf8] sm:$0xff]  ;;  %2999 = vmatprep.subr.bf16.mxu1 %v3348_v61 }
 0x267   :  { %v2916_v42 = vpack.c.bf16 %v1770_v26, %v1769_v53 }
 0x269   :  { %2917 = vmatpush1.bf16.msra.mxu0 %v2916_v42  ;;  %3001 = vmatpush1.bf16.msra.mxu1 %v3000_v24  ;;  %v2030_v42 = vld [vmem:[#allocation5 + $0x258] sm:$0xff] }
 0x26a   :  { %2918 = vmatprep.subr.bf16.mxu0 %v3348_v61  ;;  %3002 = vmatprep.subr.bf16.mxu1 %v3348_v61  ;;  %v3021_v34 = vpack.c.bf16 %v2030_v42, %v2029_v6 }
 0x26d   :  { %2920 = vmatpush1.bf16.msra.mxu0 %v2919_v43  ;;  %3004 = vmatpush1.bf16.msra.mxu1 %v3003_v16 }
 0x26e   :  { %2921 = vmatprep.subr.bf16.mxu0 %v3348_v61  ;;  %3005 = vmatprep.subr.bf16.mxu1 %v3348_v61 }
 0x271   :  { %2923 = vmatpush1.bf16.msra.mxu0 %v2922_v44  ;;  %3007 = vmatpush1.bf16.msra.mxu1 %v3006_v27 }
 0x272   :  { %2924 = vmatprep.subr.bf16.mxu0 %v3348_v61  ;;  %3008 = vmatprep.subr.bf16.mxu1 %v3348_v61 }
 0x275   :  { %2926 = vmatpush1.bf16.msra.mxu0 %v2925_v50  ;;  %3010 = vmatpush1.bf16.msra.mxu1 %v3009_v59  ;;  %v2943_v50 = vpack.c.bf16 %v1788_v51, %v1787_v39 }
 0x276   :  { %2927 = vmatprep.subr.bf16.mxu0 %v3348_v61  ;;  %3011 = vmatprep.subr.bf16.mxu1 %v3348_v61 }
 0x279   :  { %2929 = vmatpush1.bf16.msra.mxu0 %v2928_v14  ;;  %3013 = vmatpush1.bf16.msra.mxu1 %v3012_v17 }
 0x27a   :  { %2930 = vmatprep.subr.bf16.mxu0 %v3348_v61  ;;  %3014 = vmatprep.subr.bf16.mxu1 %v3348_v61 }
 0x27d   :  { %2932 = vmatpush1.bf16.msra.mxu0 %v2931_v54  ;;  %3016 = vmatpush1.bf16.msra.mxu1 %v3015_v60 }
 0x27e   :  { %2933 = vmatprep.subr.bf16.mxu0 %v3348_v61  ;;  %3017 = vmatprep.subr.bf16.mxu1 %v3348_v61 }
 0x281   :  { %2935 = vmatpush1.bf16.msra.mxu0 %v2934_v21  ;;  %3019 = vmatpush1.bf16.msra.mxu1 %v3018_v9  ;;  %v2946_v21 = vpack.c.bf16 %v1790_v5, %v1789_v15 }
 0x282   :  { %2936 = vmatprep.subr.bf16.mxu0 %v3348_v61  ;;  %3020 = vmatprep.subr.bf16.mxu1 %v3348_v61 }
 0x285   :  { %2938 = vmatpush1.bf16.msra.mxu0 %v2937_v49  ;;  %3022 = vmatpush1.bf16.msra.mxu1 %v3021_v34 }
 0x286   :  { %2939 = vmatprep.subr.bf16.mxu0 %v3348_v61  ;;  %3023 = vmatprep.subr.bf16.mxu1 %v3348_v61 }
 0x289   :  { %2941 = vmatpush1.bf16.msra.mxu0 %v2940_v56  ;;  %3025 = vmatpush1.bf16.msra.mxu1 %v3024_v55 }
 0x28a   :  { %2942 = vmatprep.subr.bf16.mxu0 %v3348_v61  ;;  %3065 = vmatprep.subr.bf16.mxu1 %v3348_v61 }
 0x28d   :  { %2944 = vmatpush1.bf16.msra.mxu0 %v2943_v50 }
 0x28e   :  { %2945 = vmatprep.subr.bf16.mxu0 %v3348_v61 }
 0x291   :  { %2947 = vmatpush1.bf16.msra.mxu0 %v2946_v21 }
 0x292   :  { %2948 = vmatprep.subr.bf16.mxu0 %v3348_v61 }
 0x31d   :  { %v1479_v30 = vpop.f32.mrb[0].mxu1 }
 0x31e   :  { %v1554_v48 = vadd.f32 %v4157_v33, %v1479_v30  ;;  %v1481_v20 = vpop.f32.mrb[1].mxu1 }
 0x31f   :  { %v1555_v3 = vadd.f32 %v4161_v47, %v1481_v20 }
 0x320   :  { %v1570_v53 = vmax.f32 %v1554_v48, 0.0 }
 0x321   :  { %v1485_v8 = vpop.f32.mrb[2].mxu1  ;;  %v1571_v28 = vmax.f32 %v1555_v3, 0.0 }
 0x322   :  { %v1556_v26 = vadd.f32 %v4157_v33, %v1485_v8  ;;  %v1487_v25 = vpop.f32.mrb[3].mxu1  ;;  %v1602_v38 = vrot.slane %v1570_v53, 2 }
 0x323   :  { %v1557_v7 = vadd.f32 %v4161_v47, %v1487_v25  ;;  %v1605_v24 = vrot.slane %v1571_v28, 2 }
 0x324   :  { %v1572_v11 = vmax.f32 %v1556_v26, 0.0 }
 0x325   :  { %v1573_v52 = vmax.f32 %v1557_v7, 0.0  ;;  %v1491_v43 = vpop.f32.mrb[4].mxu1 }
 0x326   :  { %v1603_v41 = vrot.slane %v1572_v11, 2  ;;  %v1558_v29 = vadd.f32 %v4157_v33, %v1491_v43  ;;  %v1493_v57 = vpop.f32.mrb[5].mxu1 }
 0x327   :  { %v1606_v44 = vrot.slane %v1573_v52, 2  ;;  %v1559_v4 = vadd.f32 %v4161_v47, %v1493_v57 }
 0x328   :  { %v1574_v13 = vmax.f32 %v1558_v29, 0.0  ;;  %v1604_v16 = vsel %vm116_vm0, %v1602_v38, %v1603_v41 }
 0x329   :  { %v1575_v46 = vmax.f32 %v1559_v4, 0.0  ;;  %v1497_v37 = vpop.f32.mrb[6].mxu1  ;;  %v1607_v27 = vsel %vm116_vm0, %v1605_v24, %v1606_v44  ;;  %v4174_v14 = vmax.f32 %v1570_v53, %v1604_v16 }
 0x32a   :  { %v1608_v18 = vrot.slane %v1574_v13, 2  ;;  %v1560_v1 = vadd.f32 %v4157_v33, %v1497_v37  ;;  %v1499_v2 = vpop.f32.mrb[7].mxu1  ;;  %v4177_v59 = vmax.f32 %v1571_v28, %v1607_v27 }
 0x32b   :  { %v1610_v54 = vrot.slane %v1575_v46, 2  ;;  %v1561_v19 = vadd.f32 %v4161_v47, %v1499_v2 }
 0x32c   :  { %v1576_v62 = vmax.f32 %v1560_v1, 0.0  ;;  %1676 = vrot.lane.b32.xlu1 %v4177_v59, %s3349_s5  ;;  %v1609_v17 = vsel %vm116_vm0, %v1603_v41, %v1608_v18 }
 0x32d   :  { %v1577_v31 = vmax.f32 %v1561_v19, 0.0  ;;  %v1503_v45 = vpop.f32.mrb[8].mxu1  ;;  %v4185_v32 = vmax.f32 %v1572_v11, %v1609_v17  ;;  %v1611_v22 = vsel %vm116_vm0, %v1606_v44, %v1610_v54 }
 0x32e   :  { %v1612_v60 = vrot.slane %v1576_v62, 2  ;;  %v1562_v49 = vadd.f32 %v4157_v33, %v1503_v45  ;;  %v1505_v36 = vpop.f32.mrb[9].mxu1  ;;  %v4189_v12 = vmax.f32 %v1573_v52, %v1611_v22  ;;  %v2242_v22 = vld [vmem:[#allocation5 + $0x340] sm:$0xff] }
 0x32f   :  { %v1614_v40 = vrot.slane %v1577_v31, 2  ;;  %v1563_v30 = vadd.f32 %v4161_v47, %v1505_v36  ;;  %v3261_v48 = vpack.i.bf16 %v4185_v32, %v4174_v14 }
 0x330   :  { %v1578_v20 = vmax.f32 %v1562_v49, 0.0  ;;  %v1613_v3 = vsel %vm116_vm0, %v1608_v18, %v1612_v60 }
 0x331   :  { %v1579_v10 = vmax.f32 %v1563_v30, 0.0  ;;  %3262 = vrot.lane.b32.xlu0 %v3261_v48, %s3349_s5  ;;  %v1509_v0 = vpop.f32.mrb[10].mxu1  ;;  %v4197_v8 = vmax.f32 %v1574_v13, %v1613_v3  ;;  %v1615_v9 = vsel %vm116_vm0, %v1610_v54, %v1614_v40 }
 0x332   :  { %v1616_v63 = vrot.slane %v1578_v20, 2  ;;  %v1564_v58 = vadd.f32 %v4157_v33, %v1509_v0  ;;  %v1511_v6 = vpop.f32.mrb[11].mxu1  ;;  %v4201_v53 = vmax.f32 %v1575_v46, %v1615_v9  ;;  %v1738_v0 = vld [vmem:[#allocation5] sm:$0xff]  ;;  %v1739_v9 = vld [vmem:[#allocation5 + $0x8] sm:$0xff] }
 0x333   :  { %v1618_v26 = vrot.slane %v1579_v10, 2  ;;  %v1565_v25 = vadd.f32 %v4161_v47, %v1511_v6  ;;  %1682 = vrot.lane.b32.xlu1 %v4197_v8, %s3349_s5 }
 0x334   :  { %v1580_v56 = vmax.f32 %v1564_v58, 0.0  ;;  %v1617_v42 = vsel %vm116_vm0, %v1612_v60, %v1616_v63  ;;  %v2243_v60 = vld [vmem:[#allocation5 + $0x348] sm:$0xff]  ;;  %v2245_v58 = vld [vmem:[#allocation5 + $0x358] sm:$0xff] }
 0x335   :  { %v1581_v28 = vmax.f32 %v1565_v25, 0.0  ;;  %1680 = vrot.lane.b32.xlu0 %v4189_v12, %s3349_s5  ;;  %v1515_v7 = vpop.f32.mrb[12].mxu1  ;;  %v4209_v34 = vmax.f32 %v1576_v62, %v1617_v42  ;;  %v1619_v11 = vsel %vm116_vm0, %v1614_v40, %v1618_v26  ;;  %v2949_v42 = vpack.c.bf16 %v1739_v9, %v1738_v0 }
 0x336   :  { %v1620_v52 = vrot.slane %v1580_v56, 2  ;;  %v1566_v43 = vadd.f32 %v4157_v33, %v1515_v7  ;;  %v1517_v38 = vpop.f32.mrb[13].mxu1  ;;  %v4213_v41 = vmax.f32 %v1577_v31, %v1619_v11 }
 0x337   :  { %v1622_v29 = vrot.slane %v1581_v28, 2  ;;  %v1567_v57 = vadd.f32 %v4161_v47, %v1517_v38  ;;  %1686 = vrot.lane.b32.xlu1 %v4209_v34, %s3349_s5  ;;  %v2246_v38 = vld [vmem:[#allocation5 + $0x360] sm:$0xff] }
 0x338   :  { %v1582_v24 = vmax.f32 %v1566_v43, 0.0  ;;  %v1621_v44 = vsel %vm116_vm0, %v1616_v63, %v1620_v52  ;;  %v1741_v43 = vld [vmem:[#allocation5 + $0x18] sm:$0xff] }
 0x339   :  { %v1583_v4 = vmax.f32 %v1567_v57, 0.0  ;;  %1684 = vrot.lane.b32.xlu0 %v4201_v53, %s3349_s5  ;;  %v1521_v39 = vpop.f32.mrb[14].mxu1  ;;  %v4221_v51 = vmax.f32 %v1578_v20, %v1621_v44  ;;  %v1623_v13 = vsel %vm116_vm0, %v1618_v26, %v1622_v29 }
 0x33a   :  { %v1624_v16 = vrot.slane %v1582_v24, 2  ;;  %v1568_v50 = vadd.f32 %v4157_v33, %v1521_v39  ;;  %v1523_v35 = vpop.f32.mrb[15].mxu1  ;;  %v4225_v23 = vmax.f32 %v1579_v10, %v1623_v13  ;;  %v3066_v10 = vpack.c.bf16 %v2243_v60, %v2242_v22  ;;  %v1742_v13 = vld [vmem:[#allocation5 + $0x20] sm:$0xff] }
 0x33b   :  { %v1626_v46 = vrot.slane %v1583_v4, 2  ;;  %v1569_v37 = vadd.f32 %v4161_v47, %v1523_v35  ;;  %1690 = vrot.lane.b32.xlu1 %v4221_v51, %s3349_s5 }
 0x33c   :  { %v1584_v27 = vmax.f32 %v1568_v50, 0.0  ;;  %v1625_v55 = vsel %vm116_vm0, %v1620_v52, %v1624_v16 }
 0x33d   :  { %v1585_v18 = vmax.f32 %v1569_v37, 0.0  ;;  %1688 = vrot.lane.b32.xlu0 %v4213_v41, %s3349_s5  ;;  %v4233_v1 = vmax.f32 %v1580_v56, %v1625_v55  ;;  %v1627_v33 = vsel %vm116_vm0, %v1622_v29, %v1626_v46  ;;  %v2247_v29 = vld [vmem:[#allocation5 + $0x368] sm:$0xff]  ;;  %v2248_v37 = vld [vmem:[#allocation5 + $0x370] sm:$0xff] }
 0x33e   :  { %v1628_v2 = vrot.slane %v1584_v27, 2  ;;  %v4236_v54 = vmax.f32 %v1581_v28, %v1627_v33  ;;  %v3072_v39 = vpack.c.bf16 %v2247_v29, %v2246_v38  ;;  %v2249_v27 = vld [vmem:[#allocation5 + $0x378] sm:$0xff]  ;;  %v1750_v29 = vld [vmem:[#allocation5 + $0x60] sm:$0xff] }
 0x33f   :  { %v1630_v19 = vrot.slane %v1585_v18, 2  ;;  %1694 = vrot.lane.b32.xlu1 %v4233_v1, %s3349_s5 }
 0x340   :  { %v1629_v47 = vsel %vm116_vm0, %v1624_v16, %v1628_v2 }
 0x341   :  { %1692 = vrot.lane.b32.xlu0 %v4225_v23, %s3349_s5  ;;  %v4243_v15 = vmax.f32 %v1582_v24, %v1629_v47  ;;  %v1631_v5 = vsel %vm116_vm0, %v1626_v46, %v1630_v19  ;;  %v1743_v46 = vld [vmem:[#allocation5 + $0x28] sm:$0xff]  ;;  %v3075_v47 = vpack.c.bf16 %v2249_v27, %v2248_v37 }
 0x342   :  { %v4246_v62 = vmax.f32 %v1583_v4, %v1631_v5  ;;  %v2955_v19 = vpack.c.bf16 %v1743_v46, %v1742_v13  ;;  %v1753_v13 = vld [vmem:[#allocation5 + $0x78] sm:$0xff]  ;;  %v2259_v46 = vld [vmem:[#allocation5 + $0x3c8] sm:$0xff] }
 0x343   :  { %1698 = vrot.lane.b32.xlu1 %v4243_v15, %s3349_s5 }
 0x345   :  { %1696 = vrot.lane.b32.xlu0 %v4236_v54, %s3349_s5 }
 0x349   :  { %1700 = vrot.lane.b32.xlu0 %v4246_v62, %s3349_s5 }
 0x39e   :  { %v1677_v17 = vpop.permute.xlu1 %1676 }
 0x39f   :  { %v4255_v49 = vmax.f32 %v4177_v59, %v1677_v17  ;;  %v2244_v59 = vld [vmem:[#allocation5 + $0x350] sm:$0xff] }
 0x3a0   :  { %v3069_v52 = vpack.c.bf16 %v2245_v58, %v2244_v59  ;;  %v1746_v58 = vld [vmem:[#allocation5 + $0x40] sm:$0xff] }
 0x3a1   :  { %v1804_v6 = vrot.slane %v4255_v49, 4 }
 0x3a3   :  { %v3263_v21 = vpop.permute.xlu0 %3262 }
 0x3a4   :  { %v3264_v31 = vunpack.i.l.bf16 %v3263_v21  ;;  %v3265_v36 = vunpack.i.h.bf16 %v3263_v21 }
 0x3a5   :  { %v1683_v45 = vpop.permute.xlu1 %1682 }
 0x3a6   :  { %v1703_v40 = vsel %vm1702_vm11, %v3264_v31, %v1677_v17  ;;  %v1744_v31 = vld [vmem:[#allocation5 + $0x30] sm:$0xff] }
 0x3a7   :  { %v4259_v30 = vmax.f32 %v4174_v14, %v1703_v40  ;;  %v1681_v48 = vpop.permute.xlu0 %1680 }
 0x3a8   :  { %v1704_v20 = vsel %vm1702_vm11, %v3265_v36, %v1681_v48  ;;  %v4263_v3 = vmax.f32 %v4189_v12, %v1681_v48  ;;  %v2251_v36 = vld [vmem:[#allocation5 + $0x388] sm:$0xff] }
 0x3a9   :  { %v4266_v63 = vmax.f32 %v4185_v32, %v1704_v20  ;;  %v1801_v26 = vrot.slane %v4259_v30, 4  ;;  %v1687_v25 = vpop.permute.xlu1 %1686  ;;  %v1740_v32 = vld [vmem:[#allocation5 + $0x10] sm:$0xff] }
 0x3aa   :  { %v1805_v14 = vrot.slane %v4263_v3, 4  ;;  %2702 = vmatprep.mubr.msk.f32.mxu1 %vm1823_vm12, %v4263_v3 }
 0x3ab   :  { %v1802_v12 = vrot.slane %v4266_v63, 4  ;;  %2100 = vmatmul.mubr.f32.vlgmr.msra.gmra.mrb[16].mxu1 %v4266_v63  ;;  %v1685_v56 = vpop.permute.xlu0 %1684 }
 0x3ac   :  { %3067 = vmatpush1.bf16.msra.mxu1 %v3066_v10  ;;  %v1705_v28 = vsel %vm1702_vm11, %v1683_v45, %v1685_v56  ;;  %v4277_v7 = vmax.f32 %v4201_v53, %v1685_v56  ;;  %v1806_v11 = vsel %vm1358_vm8, %v1804_v6, %v1805_v14  ;;  %v1745_v45 = vld [vmem:[#allocation5 + $0x38] sm:$0xff]  ;;  %v1747_v6 = vld [vmem:[#allocation5 + $0x48] sm:$0xff] }
 0x3ad   :  { %v4281_v57 = vmax.f32 %v4197_v8, %v1705_v28  ;;  %2694 = vmatprep.mubr.msk.f32.mxu0 %vm1823_vm12, %v1806_v11  ;;  %v1803_v24 = vsel %vm1358_vm8, %v1801_v26, %v1802_v12  ;;  %3068 = vmatprep.subr.bf16.mxu1 %v3348_v61  ;;  %v2952_v8 = vpack.c.bf16 %v1741_v43, %v1740_v32  ;;  %v1691_v55 = vpop.permute.xlu1 %1690  ;;  %v1748_v32 = vld [vmem:[#allocation5 + $0x50] sm:$0xff]  ;;  %v1749_v28 = vld [vmem:[#allocation5 + $0x58] sm:$0xff]  ;;  %v2254_v11 = vld [vmem:[#allocation5 + $0x3a0] sm:$0xff] }
 0x3ae   :  { %1897 = vmatmul.mubr.f32.vlgmr.msra.gmra.mrb[16].mxu0 %v1803_v24  ;;  %2703 = vmatprep.mubr.msk.f32.mxu1 %vm1823_vm12, %v4277_v7  ;;  %v1809_v53 = vrot.slane %v4277_v7, 4  ;;  %v2958_v10 = vpack.c.bf16 %v1745_v45, %v1744_v31  ;;  %v1751_v24 = vld [vmem:[#allocation5 + $0x68] sm:$0xff]  ;;  %v1757_v31 = vld [vmem:[#allocation5 + $0x98] sm:$0xff]  ;;  %v2262_v45 = vld [vmem:[#allocation5 + $0x3e0] sm:$0xff] }
 0x3af   :  { %2950 = vmatpush1.bf16.msra.mxu0 %v2949_v42  ;;  %2105 = vmatmul.mubr.f32.gmra.mrb[18].mxu1 %v4281_v57  ;;  %v1689_v44 = vpop.permute.xlu0 %1688  ;;  %v1807_v4 = vrot.slane %v4281_v57, 4 }
 0x3b0   :  { %3070 = vmatpush1.bf16.msra.mxu1 %v3069_v52  ;;  %v1706_v16 = vsel %vm1702_vm11, %v1687_v25, %v1689_v44  ;;  %v4293_v50 = vmax.f32 %v4213_v41, %v1689_v44  ;;  %v4296_v35 = vsel %vm1358_vm8, %v1805_v14, %v1809_v53  ;;  %2951 = vmatprep.subr.bf16.mxu0 %v3348_v61  ;;  %v2253_v25 = vld [vmem:[#allocation5 + $0x398] sm:$0xff]  ;;  %v2255_v52 = vld [vmem:[#allocation5 + $0x3a8] sm:$0xff] }
 0x3b1   :  { %v4300_v18 = vmax.f32 %v4209_v34, %v1706_v16  ;;  %2695 = vmatprep.mubr.msk.f32.mxu0 %vm1823_vm12, %v4296_v35  ;;  %v4305_v33 = vsel %vm1358_vm8, %v1802_v12, %v1807_v4  ;;  %3071 = vmatprep.subr.bf16.mxu1 %v3348_v61  ;;  %v1695_v48 = vpop.permute.xlu1 %1694  ;;  %v2252_v12 = vld [vmem:[#allocation5 + $0x390] sm:$0xff]  ;;  %v3084_v38 = vpack.c.bf16 %v2255_v52, %v2254_v11  ;;  %v2257_v44 = vld [vmem:[#allocation5 + $0x3b8] sm:$0xff]  ;;  %v2258_v16 = vld [vmem:[#allocation5 + $0x3c0] sm:$0xff] }
 0x3b2   :  { %1902 = vmatmul.mubr.f32.gmra.mrb[18].mxu0 %v4305_v33  ;;  %2704 = vmatprep.mubr.msk.f32.mxu1 %vm1823_vm12, %v4293_v50  ;;  %v1813_v41 = vrot.slane %v4293_v50, 4  ;;  %v3081_v42 = vpack.c.bf16 %v2253_v25, %v2252_v12  ;;  %v3090_v27 = vpack.c.bf16 %v2259_v46, %v2258_v16  ;;  %v1760_v12 = vld [vmem:[#allocation5 + $0xb0] sm:$0xff]  ;;  %v1761_v25 = vld [vmem:[#allocation5 + $0xb8] sm:$0xff]  ;;  %v1762_v11 = vld [vmem:[#allocation5 + $0xc0] sm:$0xff] }
 0x3b3   :  { %2953 = vmatpush1.bf16.msra.mxu0 %v2952_v8  ;;  %2109 = vmatmul.mubr.f32.gmra.mrb[20].mxu1 %v4300_v18  ;;  %v1693_v34 = vpop.permute.xlu0 %1692  ;;  %v1811_v2 = vrot.slane %v4300_v18, 4  ;;  %v1763_v52 = vld [vmem:[#allocation5 + $0xc8] sm:$0xff] }
 0x3b4   :  { %3073 = vmatpush1.bf16.msra.mxu1 %v3072_v39  ;;  %v1707_v5 = vsel %vm1702_vm11, %v1691_v55, %v1693_v34  ;;  %v4316_v17 = vmax.f32 %v4225_v23, %v1693_v34  ;;  %v4319_v21 = vsel %vm1358_vm8, %v1809_v53, %v1813_v41  ;;  %2954 = vmatprep.subr.bf16.mxu0 %v3348_v61  ;;  %v2250_v23 = vld [vmem:[#allocation5 + $0x380] sm:$0xff]  ;;  %v2256_v53 = vld [vmem:[#allocation5 + $0x3b0] sm:$0xff]  ;;  %v2124_v16 = vld [vmem:[#allocation5 + $0x288] sm:$0xff] }
 0x3b5   :  { %v4323_v22 = vmax.f32 %v4221_v51, %v1707_v5  ;;  %2696 = vmatprep.mubr.msk.f32.mxu0 %vm1823_vm12, %v4319_v21  ;;  %v4328_v60 = vsel %vm1358_vm8, %v1807_v4, %v1811_v2  ;;  %3074 = vmatprep.subr.bf16.mxu1 %v3348_v61  ;;  %v3078_v59 = vpack.c.bf16 %v2251_v36, %v2250_v23  ;;  %v1752_v39 = vld [vmem:[#allocation5 + $0x70] sm:$0xff]  ;;  %v1754_v55 = vld [vmem:[#allocation5 + $0x80] sm:$0xff]  ;;  %v2263_v23 = vld [vmem:[#allocation5 + $0x3e8] sm:$0xff] }
 0x3b6   :  { %1906 = vmatmul.mubr.f32.gmra.mrb[20].mxu0 %v4328_v60  ;;  %2705 = vmatprep.mubr.msk.f32.mxu1 %vm1823_vm12, %v4316_v17  ;;  %v1817_v40 = vrot.slane %v4316_v17, 4  ;;  %v2967_v4 = vpack.c.bf16 %v1751_v24, %v1750_v29  ;;  %v3087_v8 = vpack.c.bf16 %v2257_v44, %v2256_v53  ;;  %v2970_v37 = vpack.c.bf16 %v1753_v13, %v1752_v39  ;;  %v2260_v34 = vld [vmem:[#allocation5 + $0x3d0] sm:$0xff]  ;;  %v2122_v44 = vld [vmem:[#allocation5 + $0x278] sm:$0xff]  ;;  %v2123_v13 = vld [vmem:[#allocation5 + $0x280] sm:$0xff] }
 0x3b7   :  { %2956 = vmatpush1.bf16.msra.mxu0 %v2955_v19  ;;  %2113 = vmatmul.mubr.f32.gmra.mrb[22].mxu1 %v4323_v22  ;;  %v4336_v51 = vpop.permute.xlu0 %1696  ;;  %v1815_v20 = vrot.slane %v4323_v22, 4  ;;  %v1756_v5 = vld [vmem:[#allocation5 + $0x90] sm:$0xff]  ;;  %v2985_v29 = vpack.c.bf16 %v1763_v52, %v1762_v11  ;;  %v2136_v11 = vld [vmem:[#allocation5 + $0x2e8] sm:$0xff] }
 0x3b8   :  { %3076 = vmatpush1.bf16.msra.mxu1 %v3075_v47  ;;  %v1708_v0 = vsel %vm1702_vm11, %v1695_v48, %v4336_v51  ;;  %2710 = vmatprep.mubr.msk.f32.mxu1 %vm1823_vm12, %v4277_v7  ;;  %v4346_v9 = vsel %vm1358_vm8, %v1813_v41, %v1817_v40  ;;  %v1755_v41 = vld [vmem:[#allocation5 + $0x88] sm:$0xff]  ;;  %v2976_v36 = vpack.c.bf16 %v1757_v31, %v1756_v5  ;;  %v2121_v53 = vld [vmem:[#allocation5 + $0x270] sm:$0xff]  ;;  %v2127_v5 = vld [vmem:[#allocation5 + $0x2a0] sm:$0xff] }
 0x3b9   :  { %v4349_v14 = vmax.f32 %v4233_v1, %v1708_v0  ;;  %2697 = vmatprep.mubr.msk.f32.mxu0 %vm1823_vm12, %v4346_v9  ;;  %2957 = vmatprep.subr.bf16.mxu0 %v3348_v61  ;;  %v4355_v26 = vsel %vm1358_vm8, %v1811_v2, %v1815_v20  ;;  %v2961_v1 = vpack.c.bf16 %v1747_v6, %v1746_v58  ;;  %v2261_v2 = vld [vmem:[#allocation5 + $0x3d8] sm:$0xff]  ;;  %v2264_v0 = vld [vmem:[#allocation5 + $0x3f0] sm:$0xff]  ;;  %v2128_v31 = vld [vmem:[#allocation5 + $0x2a8] sm:$0xff] }
 0x3ba   :  { %1910 = vmatmul.mubr.f32.gmra.mrb[22].mxu0 %v4355_v26  ;;  %3077 = vmatprep.subr.bf16.mxu1 %v3348_v61  ;;  %v2973_v19 = vpack.c.bf16 %v1755_v41, %v1754_v55  ;;  %v3093_v47 = vpack.c.bf16 %v2261_v2, %v2260_v34  ;;  %v3096_v48 = vpack.c.bf16 %v2263_v23, %v2262_v45  ;;  %v2125_v41 = vld [vmem:[#allocation5 + $0x290] sm:$0xff]  ;;  %v2126_v34 = vld [vmem:[#allocation5 + $0x298] sm:$0xff] }
 0x3bb   :  { %2959 = vmatpush1.bf16.msra.mxu0 %v2958_v10  ;;  %2698 = vmatprep.mubr.msk.f32.mxu0 %vm1823_vm12, %v4255_v49  ;;  %v2149_v56 = vrot.slane %v4349_v14, 4  ;;  %v2964_v49 = vpack.c.bf16 %v1749_v28, %v1748_v32  ;;  %v1759_v10 = vld [vmem:[#allocation5 + $0xa8] sm:$0xff]  ;;  %v2982_v32 = vpack.c.bf16 %v1761_v25, %v1760_v12  ;;  %v3027_v39 = vpack.c.bf16 %v2122_v44, %v2121_v53  ;;  %v2129_v45 = vld [vmem:[#allocation5 + $0x2b0] sm:$0xff]  ;;  %v2130_v23 = vld [vmem:[#allocation5 + $0x2b8] sm:$0xff] }
 0x3bc   :  { %3079 = vmatpush1.bf16.msra.mxu1 %v3078_v59  ;;  %2960 = vmatprep.subr.bf16.mxu0 %v3348_v61  ;;  %v2265_v59 = vld [vmem:[#allocation5 + $0x3f8] sm:$0xff]  ;;  %v3030_v55 = vpack.c.bf16 %v2124_v16, %v2123_v13  ;;  %v2133_v12 = vld [vmem:[#allocation5 + $0x2d0] sm:$0xff]  ;;  %v2139_v13 = vld [vmem:[#allocation5 + $0x300] sm:$0xff] }
 0x3bd   :  { %3080 = vmatprep.subr.bf16.mxu1 %v3348_v61  ;;  %v4367_v43 = vsel %vm1358_vm8, %v1815_v20, %v2149_v56  ;;  %v1758_v20 = vld [vmem:[#allocation5 + $0xa0] sm:$0xff]  ;;  %v3099_v6 = vpack.c.bf16 %v2265_v59, %v2264_v0  ;;  %v2132_v0 = vld [vmem:[#allocation5 + $0x2c8] sm:$0xff]  ;;  %v2134_v25 = vld [vmem:[#allocation5 + $0x2d8] sm:$0xff] }
 0x3be   :  { %v2979_v58 = vpack.c.bf16 %v1759_v10, %v1758_v20  ;;  %v3039_v20 = vpack.c.bf16 %v2130_v23, %v2129_v45  ;;  %v2131_v10 = vld [vmem:[#allocation5 + $0x2c0] sm:$0xff]  ;;  %v2138_v53 = vld [vmem:[#allocation5 + $0x2f8] sm:$0xff]  ;;  %v2140_v16 = vld [vmem:[#allocation5 + $0x308] sm:$0xff] }
 0x3bf   :  { %2962 = vmatpush1.bf16.msra.mxu0 %v2961_v1  ;;  %v2266_v1 = vld [vmem:[#allocation5 + $0x400] sm:$0xff]  ;;  %v2145_v45 = vld [vmem:[#allocation5 + $0x330] sm:$0xff]  ;;  %v2146_v23 = vld [vmem:[#allocation5 + $0x338] sm:$0xff] }
 0x3c0   :  { %3082 = vmatpush1.bf16.msra.mxu1 %v3081_v42  ;;  %2963 = vmatprep.subr.bf16.mxu0 %v3348_v61  ;;  %v2267_v42 = vld [vmem:[#allocation5 + $0x408] sm:$0xff] }
 0x3c1   :  { %3083 = vmatprep.subr.bf16.mxu1 %v3348_v61  ;;  %v3102_v28 = vpack.c.bf16 %v2267_v42, %v2266_v1  ;;  %v2492_v42 = vld [vmem:[#allocation5 + $0x558] sm:$0xff] }
 0x3c3   :  { %2965 = vmatpush1.bf16.msra.mxu0 %v2964_v49  ;;  %v2477_v49 = vld [vmem:[#allocation5 + $0x4e0] sm:$0xff] }
 0x3c4   :  { %3085 = vmatpush1.bf16.msra.mxu1 %v3084_v38  ;;  %2966 = vmatprep.subr.bf16.mxu0 %v3348_v61  ;;  %v2478_v38 = vld [vmem:[#allocation5 + $0x4e8] sm:$0xff] }
 0x3c5   :  { %3086 = vmatprep.subr.bf16.mxu1 %v3348_v61  ;;  %v3144_v24 = vpack.c.bf16 %v2478_v38, %v2477_v49  ;;  %v2493_v49 = vld [vmem:[#allocation5 + $0x560] sm:$0xff]  ;;  %v2494_v38 = vld [vmem:[#allocation5 + $0x568] sm:$0xff] }
 0x3c6   :  { %v3168_v44 = vpack.c.bf16 %v2494_v38, %v2493_v49  ;;  %v2368_v38 = vld [vmem:[#allocation5 + $0x470] sm:$0xff] }
 0x3c7   :  { %2968 = vmatpush1.bf16.msra.mxu0 %v2967_v4  ;;  %v2479_v4 = vld [vmem:[#allocation5 + $0x4f0] sm:$0xff] }
 0x3c8   :  { %3088 = vmatpush1.bf16.msra.mxu1 %v3087_v8  ;;  %2969 = vmatprep.subr.bf16.mxu0 %v3348_v61  ;;  %v2480_v8 = vld [vmem:[#allocation5 + $0x4f8] sm:$0xff] }
 0x3c9   :  { %3089 = vmatprep.subr.bf16.mxu1 %v3348_v61  ;;  %v3147_v46 = vpack.c.bf16 %v2480_v8, %v2479_v4  ;;  %v2495_v4 = vld [vmem:[#allocation5 + $0x570] sm:$0xff]  ;;  %v2496_v8 = vld [vmem:[#allocation5 + $0x578] sm:$0xff] }
 0x3cb   :  { %2971 = vmatpush1.bf16.msra.mxu0 %v2970_v37  ;;  %v2481_v37 = vld [vmem:[#allocation5 + $0x500] sm:$0xff] }
 0x3cc   :  { %3091 = vmatpush1.bf16.msra.mxu1 %v3090_v27  ;;  %2972 = vmatprep.subr.bf16.mxu0 %v3348_v61  ;;  %v2482_v27 = vld [vmem:[#allocation5 + $0x508] sm:$0xff] }
 0x3cd   :  { %3092 = vmatprep.subr.bf16.mxu1 %v3348_v61  ;;  %v3150_v2 = vpack.c.bf16 %v2482_v27, %v2481_v37  ;;  %v2497_v37 = vld [vmem:[#allocation5 + $0x580] sm:$0xff]  ;;  %v2498_v27 = vld [vmem:[#allocation5 + $0x588] sm:$0xff] }
 0x3cf   :  { %2974 = vmatpush1.bf16.msra.mxu0 %v2973_v19  ;;  %v2484_v19 = vld [vmem:[#allocation5 + $0x518] sm:$0xff] }
 0x3d0   :  { %3094 = vmatpush1.bf16.msra.mxu1 %v3093_v47  ;;  %2975 = vmatprep.subr.bf16.mxu0 %v3348_v61  ;;  %v3033_v47 = vpack.c.bf16 %v2126_v34, %v2125_v41  ;;  %v2141_v41 = vld [vmem:[#allocation5 + $0x310] sm:$0xff]  ;;  %v2142_v34 = vld [vmem:[#allocation5 + $0x318] sm:$0xff] }
 0x3d1   :  { %3095 = vmatprep.subr.bf16.mxu1 %v3348_v61 }
 0x3d3   :  { %2977 = vmatpush1.bf16.msra.mxu0 %v2976_v36  ;;  %v2487_v36 = vld [vmem:[#allocation5 + $0x530] sm:$0xff] }
 0x3d4   :  { %3097 = vmatpush1.bf16.msra.mxu1 %v3096_v48  ;;  %2978 = vmatprep.subr.bf16.mxu0 %v3348_v61  ;;  %v2488_v48 = vld [vmem:[#allocation5 + $0x538] sm:$0xff] }
 0x3d5   :  { %3098 = vmatprep.subr.bf16.mxu1 %v3348_v61  ;;  %v3159_v59 = vpack.c.bf16 %v2488_v48, %v2487_v36  ;;  %v3063_v36 = vpack.c.bf16 %v2146_v23, %v2145_v45  ;;  %v2356_v48 = vld [vmem:[#allocation5 + $0x410] sm:$0xff] }
 0x3d7   :  { %2980 = vmatpush1.bf16.msra.mxu0 %v2979_v58  ;;  %v2490_v58 = vld [vmem:[#allocation5 + $0x548] sm:$0xff] }
 0x3d8   :  { %3100 = vmatpush1.bf16.msra.mxu1 %v3099_v6  ;;  %2981 = vmatprep.subr.bf16.mxu0 %v3348_v61  ;;  %v3042_v6 = vpack.c.bf16 %v2132_v0, %v2131_v10  ;;  %v2358_v0 = vld [vmem:[#allocation5 + $0x420] sm:$0xff] }
 0x3d9   :  { %3101 = vmatprep.subr.bf16.mxu1 %v3348_v61 }
 0x3db   :  { %2983 = vmatpush1.bf16.msra.mxu0 %v2982_v32  ;;  %v3045_v32 = vpack.c.bf16 %v2134_v25, %v2133_v12  ;;  %v1699_v12 = vpop.permute.xlu1 %1698 }
 0x3dc   :  { %3103 = vmatpush1.bf16.msra.mxu1 %v3102_v28  ;;  %2984 = vmatprep.subr.bf16.mxu0 %v3348_v61  ;;  %v2135_v28 = vld [vmem:[#allocation5 + $0x2e0] sm:$0xff] }
 0x3dd   :  { %3143 = vmatprep.subr.bf16.mxu1 %v3348_v61 }
 0x3df   :  { %2986 = vmatpush1.bf16.msra.mxu0 %v2985_v29  ;;  %2335 = vmatmul.mubr.f32.vlgmr.msra.gmra.mrb[24].mxu1 %v4281_v57  ;;  %v3048_v29 = vpack.c.bf16 %v2136_v11, %v2135_v28  ;;  %v2364_v11 = vld [vmem:[#allocation5 + $0x450] sm:$0xff] }
 0x3e0   :  { %2711 = vmatprep.mubr.msk.f32.mxu1 %vm1823_vm12, %v4293_v50  ;;  %3145 = vmatpush1.bf16.msra.mxu1 %v3144_v24  ;;  %v2137_v24 = vld [vmem:[#allocation5 + $0x2f0] sm:$0xff] }
 0x3e1   :  { %3026 = vmatprep.subr.bf16.mxu0 %v3348_v61  ;;  %3146 = vmatprep.subr.bf16.mxu1 %v3348_v61 }
 0x3e2   :  { %1988 = vmatmul.mubr.f32.vlgmr.msra.gmra.mrb[24].mxu0 %v4259_v30  ;;  %v2483_v30 = vld [vmem:[#allocation5 + $0x510] sm:$0xff] }
 0x3e3   :  { %2699 = vmatprep.mubr.msk.f32.mxu0 %vm1823_vm12, %v4263_v3  ;;  %3028 = vmatpush1.bf16.msra.mxu0 %v3027_v39  ;;  %v4401_v3 = vmax.f32 %v4236_v54, %v4336_v51  ;;  %v2485_v54 = vld [vmem:[#allocation5 + $0x520] sm:$0xff]  ;;  %v2486_v51 = vld [vmem:[#allocation5 + $0x528] sm:$0xff]  ;;  %v3051_v39 = vpack.c.bf16 %v2138_v53, %v2137_v24 }
 0x3e4   :  { %2340 = vmatmul.mubr.f32.gmra.mrb[26].mxu1 %v4300_v18  ;;  %3029 = vmatprep.subr.bf16.mxu0 %v3348_v61  ;;  %v2370_v53 = vld [vmem:[#allocation5 + $0x480] sm:$0xff] }
 0x3e5   :  { %2712 = vmatprep.mubr.msk.f32.mxu1 %vm1823_vm12, %v4316_v17  ;;  %3148 = vmatpush1.bf16.msra.mxu1 %v3147_v46  ;;  %v3171_v46 = vpack.c.bf16 %v2496_v8, %v2495_v4  ;;  %v2151_v25 = vrot.slane %v4401_v3, 4  ;;  %v2373_v8 = vld [vmem:[#allocation5 + $0x498] sm:$0xff] }
 0x3e6   :  { %1993 = vmatmul.mubr.f32.gmra.mrb[26].mxu0 %v4266_v63  ;;  %3149 = vmatprep.subr.bf16.mxu1 %v3348_v61  ;;  %v3153_v63 = vpack.c.bf16 %v2484_v19, %v2483_v30  ;;  %v2499_v30 = vld [vmem:[#allocation5 + $0x590] sm:$0xff]  ;;  %v2500_v19 = vld [vmem:[#allocation5 + $0x598] sm:$0xff] }
 0x3e7   :  { %2700 = vmatprep.mubr.msk.f32.mxu0 %vm1823_vm12, %v4277_v7  ;;  %3031 = vmatpush1.bf16.msra.mxu0 %v3030_v55  ;;  %v3036_v7 = vpack.c.bf16 %v2128_v31, %v2127_v5  ;;  %v3054_v55 = vpack.c.bf16 %v2140_v16, %v2139_v13  ;;  %v2143_v5 = vld [vmem:[#allocation5 + $0x320] sm:$0xff]  ;;  %v2144_v31 = vld [vmem:[#allocation5 + $0x328] sm:$0xff] }
 0x3e8   :  { %2344 = vmatmul.mubr.f32.gmra.mrb[28].mxu1 %v4323_v22  ;;  %3032 = vmatprep.subr.bf16.mxu0 %v3348_v61  ;;  %v2374_v13 = vld [vmem:[#allocation5 + $0x4a0] sm:$0xff]  ;;  %v2375_v16 = vld [vmem:[#allocation5 + $0x4a8] sm:$0xff] }
 0x3e9   :  { %2713 = vmatprep.mubr.msk.f32.mxu1 %vm1823_vm12, %v4401_v3  ;;  %3151 = vmatpush1.bf16.msra.mxu1 %v3150_v2  ;;  %v3174_v2 = vpack.c.bf16 %v2498_v27, %v2497_v37  ;;  %v2376_v37 = vld [vmem:[#allocation5 + $0x4b0] sm:$0xff]  ;;  %v2377_v27 = vld [vmem:[#allocation5 + $0x4b8] sm:$0xff] }
 0x3ea   :  { %1997 = vmatmul.mubr.f32.gmra.mrb[28].mxu0 %v4281_v57  ;;  %3152 = vmatprep.subr.bf16.mxu1 %v3348_v61  ;;  %v3156_v57 = vpack.c.bf16 %v2486_v51, %v2485_v54  ;;  %v2501_v54 = vld [vmem:[#allocation5 + $0x5a0] sm:$0xff]  ;;  %v2502_v51 = vld [vmem:[#allocation5 + $0x5a8] sm:$0xff] }
 0x3eb   :  { %2701 = vmatprep.mubr.msk.f32.mxu0 %vm1823_vm12, %v4293_v50  ;;  %3034 = vmatpush1.bf16.msra.mxu0 %v3033_v47  ;;  %v3057_v47 = vpack.c.bf16 %v2142_v34, %v2141_v41  ;;  %v2378_v41 = vld [vmem:[#allocation5 + $0x4c0] sm:$0xff]  ;;  %v2379_v34 = vld [vmem:[#allocation5 + $0x4c8] sm:$0xff] }
 0x3ec   :  { %2348 = vmatmul.mubr.f32.gmra.mrb[30].mxu1 %v4349_v14  ;;  %3035 = vmatprep.subr.bf16.mxu0 %v3348_v61 }
 0x3ed   :  { %3154 = vmatpush1.bf16.msra.mxu1 %v3153_v63  ;;  %2718 = vmatprep.mubr.msk.f32.mxu1 %vm1823_vm12, %v4293_v50  ;;  %v2489_v50 = vld [vmem:[#allocation5 + $0x540] sm:$0xff]  ;;  %v3177_v63 = vpack.c.bf16 %v2500_v19, %v2499_v30  ;;  %v2380_v30 = vld [vmem:[#allocation5 + $0x4d0] sm:$0xff]  ;;  %v2381_v19 = vld [vmem:[#allocation5 + $0x4d8] sm:$0xff] }
 0x3ee   :  { %2001 = vmatmul.mubr.f32.gmra.mrb[30].mxu0 %v4300_v18  ;;  %3155 = vmatprep.subr.bf16.mxu1 %v3348_v61  ;;  %v3162_v1 = vpack.c.bf16 %v2490_v58, %v2489_v50  ;;  %v1701_v58 = vpop.permute.xlu0 %1700 }
 0x3ef   :  { %3037 = vmatpush1.bf16.msra.mxu0 %v3036_v7  ;;  %2706 = vmatprep.mubr.msk.f32.mxu0 %vm1823_vm12, %v4296_v35  ;;  %v2491_v35 = vld [vmem:[#allocation5 + $0x550] sm:$0xff]  ;;  %v3060_v7 = vpack.c.bf16 %v2144_v31, %v2143_v5 }
 0x3f0   :  { %3038 = vmatprep.subr.bf16.mxu0 %v3348_v61  ;;  %v3165_v52 = vpack.c.bf16 %v2492_v42, %v2491_v35  ;;  %v2362_v35 = vld [vmem:[#allocation5 + $0x440] sm:$0xff]  ;;  %v2363_v42 = vld [vmem:[#allocation5 + $0x448] sm:$0xff] }
 0x3f1   :  { %3157 = vmatpush1.bf16.msra.mxu1 %v3156_v57  ;;  %v3180_v57 = vpack.c.bf16 %v2502_v51, %v2501_v54  ;;  %v3114_v28 = vpack.c.bf16 %v2363_v42, %v2362_v35 }
 0x3f2   :  { %3158 = vmatprep.subr.bf16.mxu1 %v3348_v61 }
 0x3f3   :  { %3040 = vmatpush1.bf16.msra.mxu0 %v3039_v20  ;;  %v2357_v20 = vld [vmem:[#allocation5 + $0x418] sm:$0xff] }
 0x3f4   :  { %3041 = vmatprep.subr.bf16.mxu0 %v3348_v61  ;;  %v3105_v10 = vpack.c.bf16 %v2357_v20, %v2356_v48 }
 0x3f5   :  { %3160 = vmatpush1.bf16.msra.mxu1 %v3159_v59  ;;  %v2359_v59 = vld [vmem:[#allocation5 + $0x428] sm:$0xff] }
 0x3f6   :  { %3161 = vmatprep.subr.bf16.mxu1 %v3348_v61  ;;  %v3108_v50 = vpack.c.bf16 %v2359_v59, %v2358_v0 }
 0x3f7   :  { %3043 = vmatpush1.bf16.msra.mxu0 %v3042_v6  ;;  %v2361_v6 = vld [vmem:[#allocation5 + $0x438] sm:$0xff] }
 0x3f8   :  { %3044 = vmatprep.subr.bf16.mxu0 %v3348_v61 }
 0x3f9   :  { %3163 = vmatpush1.bf16.msra.mxu1 %v3162_v1  ;;  %v4453_v1 = vmax.f32 %v4246_v62, %v1701_v58  ;;  %v2152_v62 = vsel %vm1358_vm8, %v1817_v40, %v2151_v25  ;;  %v2367_v40 = vld [vmem:[#allocation5 + $0x468] sm:$0xff] }
 0x3fa   :  { %3164 = vmatprep.subr.bf16.mxu1 %v3348_v61 }
 0x3fb   :  { %3046 = vmatpush1.bf16.msra.mxu0 %v3045_v32  ;;  %v2386_v5 = vrot.slane %v4453_v1, 4 }
 0x3fc   :  { %3047 = vmatprep.subr.bf16.mxu0 %v3348_v61 }
 0x3fd   :  { %3166 = vmatpush1.bf16.msra.mxu1 %v3165_v52  ;;  %v2365_v52 = vld [vmem:[#allocation5 + $0x458] sm:$0xff] }
 0x3fe   :  { %3167 = vmatprep.subr.bf16.mxu1 %v3348_v61 }
 0x3ff   :  { %3049 = vmatpush1.bf16.msra.mxu0 %v3048_v29  ;;  %v2369_v29 = vld [vmem:[#allocation5 + $0x478] sm:$0xff] }
 0x400   :  { %3050 = vmatprep.subr.bf16.mxu0 %v3348_v61  ;;  %v3123_v24 = vpack.c.bf16 %v2369_v29, %v2368_v38 }
 0x401   :  { %3169 = vmatpush1.bf16.msra.mxu1 %v3168_v44  ;;  %v2371_v44 = vld [vmem:[#allocation5 + $0x488] sm:$0xff] }
 0x402   :  { %3170 = vmatprep.subr.bf16.mxu1 %v3348_v61  ;;  %v3126_v4 = vpack.c.bf16 %v2371_v44, %v2370_v53 }
 0x403   :  { %3052 = vmatpush1.bf16.msra.mxu0 %v3051_v39 }
 0x404   :  { %3053 = vmatprep.subr.bf16.mxu0 %v3348_v61 }
 0x405   :  { %3172 = vmatpush1.bf16.msra.mxu1 %v3171_v46  ;;  %v3132_v46 = vpack.c.bf16 %v2375_v16, %v2374_v13 }
 0x406   :  { %3173 = vmatprep.subr.bf16.mxu1 %v3348_v61 }
 0x407   :  { %3055 = vmatpush1.bf16.msra.mxu0 %v3054_v55  ;;  %v3135_v55 = vpack.c.bf16 %v2377_v27, %v2376_v37 }
 0x408   :  { %3056 = vmatprep.subr.bf16.mxu0 %v3348_v61 }
 0x409   :  { %3175 = vmatpush1.bf16.msra.mxu1 %v3174_v2  ;;  %v3138_v2 = vpack.c.bf16 %v2379_v34, %v2378_v41 }
 0x40a   :  { %3176 = vmatprep.subr.bf16.mxu1 %v3348_v61 }
 0x40b   :  { %3058 = vmatpush1.bf16.msra.mxu0 %v3057_v47  ;;  %v3141_v47 = vpack.c.bf16 %v2381_v19, %v2380_v30 }
 0x40c   :  { %3059 = vmatprep.subr.bf16.mxu0 %v3348_v61 }
 0x40d   :  { %3178 = vmatpush1.bf16.msra.mxu1 %v3177_v63 }
 0x40e   :  { %3179 = vmatprep.subr.bf16.mxu1 %v3348_v61 }
 0x40f   :  { %3061 = vmatpush1.bf16.msra.mxu0 %v3060_v7 }
 0x410   :  { %3062 = vmatprep.subr.bf16.mxu0 %v3348_v61 }
 0x411   :  { %3181 = vmatpush1.bf16.msra.mxu1 %v3180_v57 }
 0x413   :  { %3064 = vmatpush1.bf16.msra.mxu0 %v3063_v36 }
 0x414   :  { %2570 = vmatmul.mubr.f32.vlgmr.msra.gmra.mrb[32].mxu1 %v4300_v18  ;;  %3104 = vmatprep.subr.bf16.mxu0 %v3348_v61  ;;  %v2360_v18 = vld [vmem:[#allocation5 + $0x430] sm:$0xff] }
 0x415   :  { %2719 = vmatprep.mubr.msk.f32.mxu1 %vm1823_vm12, %v4316_v17  ;;  %v2366_v17 = vld [vmem:[#allocation5 + $0x460] sm:$0xff] }
 0x416   :  { %2221 = vmatmul.mubr.f32.vlgmr.msra.gmra.mrb[32].mxu0 %v4305_v33  ;;  %v1709_v33 = vsel %vm1702_vm11, %v1699_v12, %v1701_v58  ;;  %v3120_v49 = vpack.c.bf16 %v2367_v40, %v2366_v17 }
 0x417   :  { %2707 = vmatprep.mubr.msk.f32.mxu0 %vm1823_vm12, %v4319_v21  ;;  %3106 = vmatpush1.bf16.msra.mxu0 %v3105_v10  ;;  %v4462_v32 = vmax.f32 %v4243_v15, %v1709_v33  ;;  %v3117_v15 = vpack.c.bf16 %v2365_v52, %v2364_v11 }
 0x418   :  { %2575 = vmatmul.mubr.f32.gmra.mrb[34].mxu1 %v4323_v22  ;;  %3107 = vmatprep.subr.bf16.mxu0 %v3348_v61  ;;  %v3111_v22 = vpack.c.bf16 %v2361_v6, %v2360_v18 }
 0x419   :  { %2720 = vmatprep.mubr.msk.f32.mxu1 %vm1823_vm12, %v4401_v3  ;;  %v2384_v31 = vrot.slane %v4462_v32, 4 }
 0x41a   :  { %2226 = vmatmul.mubr.f32.gmra.mrb[34].mxu0 %v4328_v60 }
 0x41b   :  { %2708 = vmatprep.mubr.msk.f32.mxu0 %vm1823_vm12, %v4346_v9  ;;  %3109 = vmatpush1.bf16.msra.mxu0 %v3108_v50 }
 0x41c   :  { %2579 = vmatmul.mubr.f32.gmra.mrb[36].mxu1 %v4349_v14  ;;  %3110 = vmatprep.subr.bf16.mxu0 %v3348_v61 }
 0x41d   :  { %2721 = vmatprep.mubr.msk.f32.mxu1 %vm1823_vm12, %v4453_v1 }
 0x41e   :  { %2230 = vmatmul.mubr.f32.gmra.mrb[36].mxu0 %v4355_v26 }
 0x41f   :  { %2709 = vmatprep.mubr.msk.f32.mxu0 %vm1823_vm12, %v2152_v62  ;;  %3112 = vmatpush1.bf16.msra.mxu0 %v3111_v22 }
 0x420   :  { %2583 = vmatmul.mubr.f32.gmra.mrb[38].mxu1 %v4462_v32  ;;  %3113 = vmatprep.subr.bf16.mxu0 %v3348_v61 }
 0x422   :  { %2234 = vmatmul.mubr.f32.gmra.mrb[38].mxu0 %v4367_v43 }
 0x423   :  { %3115 = vmatpush1.bf16.msra.mxu0 %v3114_v28  ;;  %2714 = vmatprep.mubr.msk.f32.mxu0 %vm1823_vm12, %v4319_v21  ;;  %v2372_v21 = vld [vmem:[#allocation5 + $0x490] sm:$0xff] }
 0x424   :  { %3116 = vmatprep.subr.bf16.mxu0 %v3348_v61  ;;  %v3129_v39 = vpack.c.bf16 %v2373_v8, %v2372_v21 }
 0x427   :  { %3118 = vmatpush1.bf16.msra.mxu0 %v3117_v15 }
 0x428   :  { %3119 = vmatprep.subr.bf16.mxu0 %v3348_v61 }
 0x42b   :  { %3121 = vmatpush1.bf16.msra.mxu0 %v3120_v49 }
 0x42c   :  { %3122 = vmatprep.subr.bf16.mxu0 %v3348_v61 }
 0x42f   :  { %3124 = vmatpush1.bf16.msra.mxu0 %v3123_v24 }
 0x430   :  { %3125 = vmatprep.subr.bf16.mxu0 %v3348_v61 }
 0x433   :  { %3127 = vmatpush1.bf16.msra.mxu0 %v3126_v4 }
 0x434   :  { %3128 = vmatprep.subr.bf16.mxu0 %v3348_v61 }
 0x437   :  { %3130 = vmatpush1.bf16.msra.mxu0 %v3129_v39 }
 0x438   :  { %3131 = vmatprep.subr.bf16.mxu0 %v3348_v61 }
 0x43b   :  { %3133 = vmatpush1.bf16.msra.mxu0 %v3132_v46 }
 0x43c   :  { %3134 = vmatprep.subr.bf16.mxu0 %v3348_v61 }
 0x43f   :  { %3136 = vmatpush1.bf16.msra.mxu0 %v3135_v55 }
 0x440   :  { %3137 = vmatprep.subr.bf16.mxu0 %v3348_v61 }
 0x443   :  { %3139 = vmatpush1.bf16.msra.mxu0 %v3138_v2 }
 0x444   :  { %3140 = vmatprep.subr.bf16.mxu0 %v3348_v61  ;;  %v2387_v61 = vsel %vm1358_vm8, %v2151_v25, %v2386_v5 }
 0x447   :  { %3142 = vmatpush1.bf16.msra.mxu0 %v3141_v47 }
 0x44a   :  { %2456 = vmatmul.mubr.f32.vlgmr.msra.gmra.mrb[40].mxu0 %v4328_v60  ;;  %v2385_v60 = vsel %vm1358_vm8, %v2149_v56, %v2384_v31 }
 0x44b   :  { %2715 = vmatprep.mubr.msk.f32.mxu0 %vm1823_vm12, %v4346_v9 }
 0x44e   :  { %2461 = vmatmul.mubr.f32.gmra.mrb[42].mxu0 %v4355_v26 }
 0x44f   :  { %2716 = vmatprep.mubr.msk.f32.mxu0 %vm1823_vm12, %v2152_v62 }
 0x452   :  { %2465 = vmatmul.mubr.f32.gmra.mrb[44].mxu0 %v4367_v43 }
 0x453   :  { %2717 = vmatprep.mubr.msk.f32.mxu0 %vm1823_vm12, %v2387_v61 }
 0x456   :  { %2469 = vmatmul.mubr.f32.gmra.mrb[46].mxu0 %v2385_v60 }
 0x47e   :  { %v2101_v9 = vpop.f32.mrb[16].mxu1 }
 0x47f   :  { %v2103_v63 = vpop.f32.mrb[17].mxu1 }
 0x481   :  { %v1898_v26 = vpop.f32.mrb[16].mxu0 }
 0x482   :  { %v1900_v54 = vpop.f32.mrb[17].mxu0  ;;  %v2106_v51 = vpop.f32.mrb[18].mxu1 }
 0x483   :  { %v2107_v7 = vpop.f32.mrb[19].mxu1  ;;  %v2722_v51 = vld [vmem:[%s4522_s7] ss:$0 sm:$0xff] }
 0x485   :  { %v1903_v45 = vpop.f32.mrb[18].mxu0 }
 0x486   :  { %v1904_v23 = vpop.f32.mrb[19].mxu0  ;;  %v2110_v43 = vpop.f32.mrb[20].mxu1 }
 0x487   :  { %v2111_v57 = vpop.f32.mrb[21].mxu1 }
 0x489   :  { %v1907_v3 = vpop.f32.mrb[20].mxu0 }
 0x48a   :  { %v1908_v36 = vpop.f32.mrb[21].mxu0  ;;  %v2114_v48 = vpop.f32.mrb[22].mxu1 }
 0x48b   :  { %v2116_v20 = vpop.f32.mrb[23].mxu1 }
 0x48d   :  { %v1911_v10 = vpop.f32.mrb[22].mxu0 }
 0x48e   :  { %v1913_v0 = vpop.f32.mrb[23].mxu0 }
 0x4b2   :  { %v2336_v14 = vpop.f32.mrb[24].mxu1 }
 0x4b3   :  { %v2338_v59 = vpop.f32.mrb[25].mxu1 }
 0x4b5   :  { %v1989_v56 = vpop.f32.mrb[24].mxu0 }
 0x4b6   :  { %v1990_v50 = vadd.f32 %v1989_v56, %v1898_v26  ;;  %v1991_v58 = vpop.f32.mrb[25].mxu0 }
 0x4b7   :  { %v2341_v18 = vpop.f32.mrb[26].mxu1 }
 0x4b8   :  { %v2342_v6 = vpop.f32.mrb[27].mxu1  ;;  %v2118_v12 = vadd.f32 %v2101_v9, %v1990_v50 }
 0x4b9   :  { %v1994_v25 = vpop.f32.mrb[26].mxu0 }
 0x4ba   :  { %v1995_v33 = vpop.f32.mrb[27].mxu0 }
 0x4bb   :  { %v2345_v1 = vpop.f32.mrb[28].mxu1 }
 0x4bc   :  { %v2346_v22 = vpop.f32.mrb[29].mxu1 }
 0x4bd   :  { %v1998_v35 = vpop.f32.mrb[28].mxu0 }
 0x4be   :  { %v1999_v42 = vpop.f32.mrb[29].mxu0 }
 0x4bf   :  { %v2349_v32 = vpop.f32.mrb[30].mxu1 }
 0x4c0   :  { %v2351_v62 = vpop.f32.mrb[31].mxu1 }
 0x4c1   :  { %v2002_v28 = vpop.f32.mrb[30].mxu0 }
 0x4c2   :  { %v2003_v11 = vadd.f32 %v2002_v28, %v1911_v10  ;;  %v2004_v52 = vpop.f32.mrb[31].mxu0 }
 0x4c4   :  { %v2119_v15 = vadd.f32 %v2114_v48, %v2003_v11 }
 0x4e7   :  { %v2571_v17 = vpop.f32.mrb[32].mxu1 }
 0x4e8   :  { %v2573_v40 = vpop.f32.mrb[33].mxu1 }
 0x4e9   :  { %v2222_v49 = vpop.f32.mrb[32].mxu0 }
 0x4ea   :  { %v2239_v38 = vadd.f32 %v2222_v49, %v2118_v12  ;;  %v2224_v29 = vpop.f32.mrb[33].mxu0 }
 0x4eb   :  { %v2576_v24 = vpop.f32.mrb[34].mxu1 }
 0x4ec   :  { %v2577_v53 = vpop.f32.mrb[35].mxu1  ;;  %v2353_v44 = vadd.f32 %v2336_v14, %v2239_v38 }
 0x4ed   :  { %v2227_v4 = vpop.f32.mrb[34].mxu0 }
 0x4ee   :  { %v2228_v21 = vpop.f32.mrb[35].mxu0 }
 0x4ef   :  { %v2580_v8 = vpop.f32.mrb[36].mxu1 }
 0x4f0   :  { %v2581_v39 = vpop.f32.mrb[37].mxu1 }
 0x4f1   :  { %v2231_v13 = vpop.f32.mrb[36].mxu0 }
 0x4f2   :  { %v2232_v16 = vpop.f32.mrb[37].mxu0 }
 0x4f3   :  { %v2584_v46 = vpop.f32.mrb[38].mxu1 }
 0x4f4   :  { %v2586_v37 = vpop.f32.mrb[39].mxu1 }
 0x4f5   :  { %v2235_v27 = vpop.f32.mrb[38].mxu0 }
 0x4f6   :  { %v2240_v55 = vadd.f32 %v2235_v27, %v2119_v15  ;;  %v2237_v41 = vpop.f32.mrb[39].mxu0 }
 0x4f8   :  { %v2354_v34 = vadd.f32 %v2349_v32, %v2240_v55 }
 0x51d   :  { %v2457_v2 = vpop.f32.mrb[40].mxu0 }
 0x51e   :  { %v2474_v30 = vadd.f32 %v2457_v2, %v2353_v44  ;;  %v2459_v19 = vpop.f32.mrb[41].mxu0 }
 0x520   :  { %v2588_v47 = vadd.f32 %v2571_v17, %v2474_v30 }
 0x521   :  { %v2462_v5 = vpop.f32.mrb[42].mxu0 }
 0x522   :  { %v2463_v31 = vpop.f32.mrb[43].mxu0  ;;  %v2597_v45 = vadd.f32 %v2722_v51, %v2588_v47 }
 0x525   :  { %v2466_v61 = vpop.f32.mrb[44].mxu0 }
 0x526   :  { %v2467_v60 = vpop.f32.mrb[45].mxu0 }
 0x529   :  { %v2470_v9 = vpop.f32.mrb[46].mxu0 }
 0x52a   :  { %v2475_v63 = vadd.f32 %v2470_v9, %v2354_v34  ;;  %v2472_v26 = vpop.f32.mrb[47].mxu0 }
 0x52c   :  { %v2589_v54 = vadd.f32 %v2584_v46, %v2475_v63 }
 0x52e   :  { %v2598_v7 = vadd.f32 %v2722_v51, %v2589_v54 }
 0x530   :  { %v2600_v23 = vrot.slane %v2598_v7, 5 }
 0x532   :  { %v2603_v43 = vsel %vm2602_vm13, %v2597_v45, %v2600_v23 }
 0x533   :  { %2604 = vst [vmem:[#allocation7] sm:$0x3] %v2603_v43 }
 0x534   :  { %3321 = shalt.err (!%p3318_p6)
}
 0x535   :  { %s3322_s7 = scalar_lea.hbm %s4523_s8, 32 }
 0x536   :  { %p3323_p7 = scmp.ne.s32.totalorder %s4523_s8, %s3322_s7  ;;  %p3326_p8 = scmp.lt.u32.totalorder %s3322_s7, %s4523_s8 }
 0x538   :  { %p3328_p9 = pnand %p3326_p8, %p3323_p7 }
 0x53a   :  { %3331 = shalt.err (!%p3328_p9)
}
 0x53b   :  { %2614 = dma.vmem_to_hbm [thread:$0]  %s2612_s29, 32, %s4523_s8, [#allocation4]  }
 0x53c   :  { %3336 = dma.done.wait [#allocation4], 32  }
 0x53d   :  { %3337 = vsyncadd [#allocation4], 4294967264 }
 0x53e   :  { %2618 = vsyncpa [#allocation3], 1 }
 0x53f   :  { %2619 = vsyncpa [#allocation6], 1 }
 0x540   :  { %2620 = vsyncpa [#allocation4], 1 }

</bundles_post_ra>
